<compile_context>
chip_gen: v5e
topology: v5e:2x2
jax: 0.10.0
libtpu: 0.0.40
codegen_flags: <defaults>
</compile_context>

<pallas_src>
import functools
import math

import numpy as np
import jax
import jax.numpy as jnp
from jax import lax
from jax.experimental import pallas as pl
from jax.experimental.pallas import tpu as pltpu


def _canny_kernel(img_ref, ax_ref, ay_ref, bxt_ref, byt_ref, out_ref, *,
                  low2, high2, dl, max_bodies, steps_per_check, hdt):
    _, C, H, W = img_ref.shape

    # Hoisted iotas (JAX does not CSE broadcast_in_dim).
    row = lax.broadcasted_iota(jnp.int32, (H, W), 0)
    col = lax.broadcasted_iota(jnp.int32, (H, W), 1)

    def shift(x, dy, dx, mask=True):
        """y[i, j] = x[i + dy, j + dx]; zero-padded if mask else wrap-around."""
        if dy != 0:
            x = pltpu.roll(x, (-dy) % H, axis=0)
        if dx != 0:
            x = pltpu.roll(x, (-dx) % W, axis=1)
        if mask and (dy != 0 or dx != 0):
            conds = []
            if dy > 0:
                conds.append(row < H - dy)
            elif dy < 0:
                conds.append(row >= -dy)
            if dx > 0:
                conds.append(col < W - dx)
            elif dx < 0:
                conds.append(col >= -dx)
            m = conds[0]
            for c in conds[1:]:
                m = m & c
            x = jnp.where(m, x, 0)
        return x

    # 1) channel mean (torch.mean(img, dim=0))
    gray = jnp.mean(img_ref[0].astype(jnp.float32), axis=0)            # (H, W)

    # 2+3) separable Gaussian blur + Sobel, fused into banded matmuls (MXU).
    # TODO(synk): skimage.canny also normalizes by a blurred border mask
    # (bleed-over correction); not reproduced here.
    gx = jnp.dot(jnp.dot(ax_ref[...], gray, preferred_element_type=jnp.float32),
                 bxt_ref[...], preferred_element_type=jnp.float32)
    gy = jnp.dot(jnp.dot(ay_ref[...], gray, preferred_element_type=jnp.float32),
                 byt_ref[...], preferred_element_type=jnp.float32)
    mag2 = gx * gx + gy * gy      # squared magnitude (sqrt dropped; monotone)

    # 4) non-maximum suppression (4-sector quantized direction)
    # TODO(synk): skimage uses sub-pixel interpolated NMS; quantized here.
    # Neighbor shifts are UNMASKED: wrap-around only affects border pixels,
    # which the `interior` mask discards.
    agx, agy = jnp.abs(gx), jnp.abs(gy)
    t = jnp.float32(2.414213562)            # tan(67.5 deg)
    horiz = agx >= t * agy
    vert = agy >= t * agx
    same_sign = (gx * gy) >= 0.0

    # Diagonal neighbours come from the already row-rolled planes (8 rolls
    # total); n1/n2 built incrementally so shifted planes die early.
    mS = shift(mag2, 1, 0, mask=False)
    mN = shift(mag2, -1, 0, mask=False)
    n1 = jnp.where(same_sign, shift(mS, 0, 1, mask=False),      # mSE / mSW
                   shift(mS, 0, -1, mask=False))
    n2 = jnp.where(same_sign, shift(mN, 0, -1, mask=False),     # mNW / mNE
                   shift(mN, 0, 1, mask=False))
    n1 = jnp.where(vert, mS, n1)
    n2 = jnp.where(vert, mN, n2)
    n1 = jnp.where(horiz, shift(mag2, 0, 1, mask=False), n1)    # mE
    n2 = jnp.where(horiz, shift(mag2, 0, -1, mask=False), n2)   # mW

    keep = (mag2 >= n1) & (mag2 >= n2) & (mag2 > 0.0)
    interior = (row >= 1) & (row <= H - 2) & (col >= 1) & (col <= W - 2)
    nms2 = jnp.where(keep & interior, mag2, 0.0)

    # 5) double threshold + hysteresis (8-connected propagation)
    # TODO(synk): true hysteresis is an unbounded flood fill; bounded here by
    # (H + W) Chebyshev steps with an early convergence exit.
    weak = (nms2 > low2).astype(hdt)
    strong0 = (nms2 > high2).astype(hdt)

    def prop(s):
        # Separable 3x3 max.  No border masks: weak == 0 on the 1-px border,
        # so wrapped values are annihilated by `* weak` or land on pixels
        # whose output is already 0.  Since strong ⊆ weak and the 3x3 max
        # includes the pixel itself, the result is >= s, so the previous
        # outer maximum(s, ...) was redundant.
        v = jnp.maximum(s, jnp.maximum(pltpu.roll(s, 1, axis=0),
                                       pltpu.roll(s, H - 1, axis=0)))
        d = jnp.maximum(v, jnp.maximum(pltpu.roll(v, 1, axis=1),
                                       pltpu.roll(v, W - 1, axis=1)))
        return d * weak

    def cond_fn(carry):
        it, _, changed = carry
        return jnp.logical_and(it < max_bodies, changed > 0)

    def body_fn(carry):
        it, s, _ = carry
        s_new = s
        for _ in range(steps_per_check):
            s_new = prop(s_new)
        # s is monotone non-decreasing in {0,1}; diff is exactly 0 or 1.
        changed = (jnp.max(s_new - s) > 0).astype(jnp.int32)
        return it + 1, s_new, changed

    _, strong, _ = lax.while_loop(
        cond_fn, body_fn, (jnp.int32(0), strong0, jnp.int32(1)))

    # 6) optional morphological dilation with disk(dl)
    # Exact row-segment decomposition of the disk:
    #   result = max_{|dy|<=dl} shift(hmax[rx(dy)], dy, 0)
    #   hmax[r] = max_{|dx|<=r} shift(strong, 0, dx), rx(dy)=floor(sqrt(dl^2-dy^2))
    if dl > 0:
        hmax = [strong]
        for r in range(1, dl + 1):
            nm = r >= 2            # |shift| == 1 only wraps the zero border col
            hmax.append(jnp.maximum(
                hmax[-1],
                jnp.maximum(shift(strong, 0, r, mask=nm),
                            shift(strong, 0, -r, mask=nm))))
        d = hmax[dl]
        for dy in range(1, dl + 1):
            rx = int(math.isqrt(dl * dl - dy * dy))
            nm = dy >= 2           # |shift| == 1 only wraps the zero border row
            h = hmax[rx]
            d = jnp.maximum(d, jnp.maximum(shift(h, dy, 0, mask=nm),
                                           shift(h, -dy, 0, mask=nm)))
        strong = d

    out_ref[0] = strong.astype(jnp.float32)


def _banded(n, w):
    """n x n matrix M with M[i, i+k] = w[k+R] (zero-padded 1-D correlation)."""
    w = np.asarray(w, dtype=np.float64)
    R = (len(w) - 1) // 2
    m = np.zeros((n, n), dtype=np.float64)
    for k in range(-R, R + 1):
        if abs(k) < n:
            m += w[k + R] * np.eye(n, k=k)
    return m


def _device_kind():
    try:
        return jax.devices()[0].device_kind.lower()
    except Exception:
        return ""


def _make_call(B, C, H, W, gauss_w, low2, high2, dl, hdt, vmem_limit):
    GH, GW = _banded(H, gauss_w), _banded(W, gauss_w)
    SMOOTH = (1.0, 2.0, 1.0)
    DERIV = (-1.0, 0.0, 1.0)
    Ax = jnp.asarray((_banded(H, SMOOTH) @ GH).astype(np.float32))     # S_H G_H
    Ay = jnp.asarray((_banded(H, DERIV) @ GH).astype(np.float32))      # D_H G_H
    BxT = jnp.asarray((_banded(W, DERIV) @ GW).T.astype(np.float32))   # (D_W G_W)^T
    ByT = jnp.asarray((_banded(W, SMOOTH) @ GW).T.astype(np.float32))  # (S_W G_W)^T

    steps_per_check = 8
    max_bodies = -(-(H + W) // steps_per_check)        # ceil((H+W)/steps)

    kernel = functools.partial(
        _canny_kernel,
        low2=low2, high2=high2, dl=dl,
        max_bodies=max_bodies, steps_per_check=steps_per_check, hdt=hdt)

    call = pl.pallas_call(
        kernel,
        out_shape=jax.ShapeDtypeStruct((B, H, W), jnp.float32),
        grid=(B,),
        in_specs=[
            pl.BlockSpec((1, C, H, W), lambda b: (b, 0, 0, 0)),
            pl.BlockSpec((H, H), lambda b: (0, 0)),
            pl.BlockSpec((H, H), lambda b: (0, 0)),
            pl.BlockSpec((W, W), lambda b: (0, 0)),
            pl.BlockSpec((W, W), lambda b: (0, 0)),
        ],
        out_specs=pl.BlockSpec((1, H, W), lambda b: (b, 0, 0)),
        compiler_params=pltpu.CompilerParams(
            dimension_semantics=("parallel",),
            vmem_limit_bytes=vmem_limit),
    )

    def run(imgs):
        return call(imgs, Ax, Ay, BxT, ByT)

    return jax.jit(run)


@functools.lru_cache(maxsize=None)
def _build_canny_call(B, C, H, W, sigma, dl, low, high):
    radius = int(4.0 * sigma + 0.5)                     # scipy truncate=4.0
    k = np.arange(-radius, radius + 1, dtype=np.float64)
    gw = np.exp(-0.5 * (k / sigma) ** 2)
    gauss_w = tuple(float(v) for v in (gw / gw.sum()))

    kind = _device_kind()
    # bf16 hysteresis state on v6e/v7x (values are exactly {0,1}); keep f32 on
    # v5/earlier where bf16 elementwise is emulated.
    prefer_bf16 = not any(g in kind for g in ("v2", "v3", "v4", "v5"))

    # Generation-aware VMEM budget: leave headroom under v7x's 64 MiB.
    plane = H * W * 4
    est = (2 * C + 2 + 20) * plane + 4 * (H * H + W * W) * 4
    cap = (48 << 20) if "7" in kind else (96 << 20)
    vmem_limit = int(min(max(est, 32 << 20), cap))

    candidates = [jnp.bfloat16, jnp.float32] if prefer_bf16 else [jnp.float32]
    last_err = None
    for hdt in candidates:
        fn = _make_call(B, C, H, W, gauss_w, float(low) ** 2, float(high) ** 2,
                        int(dl), hdt, vmem_limit)
        try:
            # Warm compile + run once; fall back to f32 state on any failure.
            jax.block_until_ready(fn(jnp.zeros((B, C, H, W), jnp.float32)))
            return fn
        except Exception as e:                          # pragma: no cover
            last_err = e
    raise last_err


def canny_edges_batch(imgs, *, sigma=1.0, dl=0, low=0.1, high=0.2):
    """imgs: (B, C, H, W) float -> (B, H, W) float32 edge maps in {0, 1}."""
    imgs = jnp.asarray(imgs, dtype=jnp.float32)
    B, C, H, W = imgs.shape
    fn = _build_canny_call(int(B), int(C), int(H), int(W), float(sigma),
                           int(dl), float(low), float(high))
    return fn(imgs)


def canny_edges(img, *, sigma=1.0, dl=0, low=0.1, high=0.2):
    """img: (C, H, W) float -> (H, W) float32 edge map in {0, 1}."""
    return canny_edges_batch(img[None], sigma=sigma, dl=dl,
                             low=low, high=high)[0]


class ToEdges:
    """JAX/Pallas port of data/aug.py::ToEdges."""

    def __init__(self, sigma='1.0', dil='0', seed=None):
        self.sigma = [float(x) for x in sigma.split(',')]
        self.dil = [int(x) for x in dil.split(',')]
        # Host-side RNG for the augmentation choice (no device syncs).
        self._rng = np.random.default_rng(seed)

    def __call__(self, img):
        sig = self.sigma[int(self._rng.integers(len(self.sigma)))]
        dl = self.dil[int(self._rng.integers(len(self.dil)))]
        edges = canny_edges(img, sigma=sig, dl=dl)                 # (H, W)
        # torch.Tensor(edg).unsqueeze(0).repeat([3, 1, 1])
        return jnp.broadcast_to(edges[None, :, :], (3,) + edges.shape)

    def __repr__(self):
        return self.__class__.__name__ + '(sigma={})'.format(self.sigma)


if __name__ == "__main__":
    key = jax.random.PRNGKey(0)
    img = jax.random.uniform(key, (3, 32, 32), dtype=jnp.float32)  # CHW in [0,1]

    mod = ToEdges(sigma='1.0', dil='0', seed=0)
    out = jax.block_until_ready(mod(img))
    assert out.shape == (3, 32, 32)
    assert out.dtype == jnp.float32

    # Larger-sigma + disk-dilation path.
    mod2 = ToEdges(sigma='2.0', dil='1', seed=0)
    out2 = jax.block_until_ready(mod2(img))
    assert out2.shape == (3, 32, 32)

    # Batched path (grid=(B,) marked "parallel": pipelining / megacore).
    imgs = jax.random.uniform(jax.random.PRNGKey(1), (2, 3, 32, 32),
                              dtype=jnp.float32)
    outs = jax.block_until_ready(canny_edges_batch(imgs, sigma=1.0, dl=0))
    assert outs.shape == (2, 32, 32)

    print("KERNEL_OK")
</pallas_src>

<mosaic_0001>
module attributes {stable_mosaic.version = 11 : i64} {
  func.func @_canny_kernel(%arg0: i32, %arg1: memref<1x3x32x32xf32, #tpu.memory_space<vmem>>, %arg2: memref<32x32xf32, #tpu.memory_space<vmem>>, %arg3: memref<32x32xf32, #tpu.memory_space<vmem>>, %arg4: memref<32x32xf32, #tpu.memory_space<vmem>>, %arg5: memref<32x32xf32, #tpu.memory_space<vmem>>, %arg6: memref<1x32x32xf32, #tpu.memory_space<vmem>>) attributes {dimension_semantics = [#tpu.dimension_semantics<parallel>], iteration_bounds = array<i64: 1>, scalar_prefetch = 0 : i64, scratch_operands = 0 : i64, tpu.core_type = #tpu.core_type<tc>, window_params = [{transform_indices = @transform_0, window_bounds = array<i64: 1, 3, 32, 32>}, {pipeline_mode = #tpu.pipeline_mode<synchronous>, transform_indices = @transform_1, window_bounds = array<i64: 32, 32>}, {pipeline_mode = #tpu.pipeline_mode<synchronous>, transform_indices = @transform_2, window_bounds = array<i64: 32, 32>}, {pipeline_mode = #tpu.pipeline_mode<synchronous>, transform_indices = @transform_3, window_bounds = array<i64: 32, 32>}, {pipeline_mode = #tpu.pipeline_mode<synchronous>, transform_indices = @transform_4, window_bounds = array<i64: 32, 32>}, {transform_indices = @transform_5, window_bounds = array<i64: 1, 32, 32>}]} {
    %0 = tpu.iota {dimensions = array<i32: 0>} : vector<32x32xi32>
    %1 = tpu.iota {dimensions = array<i32: 1>} : vector<32x32xi32>
    %c0 = arith.constant 0 : index
    %c0_0 = arith.constant 0 : index
    %c0_1 = arith.constant 0 : index
    %c0_2 = arith.constant 0 : index
    %2 = vector.load %arg1[%c0, %c0_0, %c0_1, %c0_2] : memref<1x3x32x32xf32, #tpu.memory_space<vmem>>, vector<1x3x32x32xf32>
    %3 = vector.shape_cast %2 : vector<1x3x32x32xf32> to vector<3x32x32xf32>
    %cst = arith.constant dense<0.000000e+00> : vector<32x32xf32>
    %4 = vector.multi_reduction <add>, %3, %cst [0] : vector<3x32x32xf32> to vector<32x32xf32>
    %cst_3 = arith.constant 3.000000e+00 : f32
    %5 = vector.broadcast %cst_3 : f32 to vector<32x32xf32>
    %6 = arith.divf %4, %5 : vector<32x32xf32>
    %c0_4 = arith.constant 0 : index
    %c0_5 = arith.constant 0 : index
    %7 = vector.load %arg2[%c0_4, %c0_5] : memref<32x32xf32, #tpu.memory_space<vmem>>, vector<32x32xf32>
    %cst_6 = arith.constant dense<0.000000e+00> : vector<32x32xf32>
    %8 = tpu.matmul %7, %6, %cst_6 {dimension_numbers = #tpu.dot_dimension_numbers<[1], [0], [0], [1], [0, 0, 1, 1], [], []>} : vector<32x32xf32>, vector<32x32xf32>, vector<32x32xf32> -> vector<32x32xf32>
    %c0_7 = arith.constant 0 : index
    %c0_8 = arith.constant 0 : index
    %9 = vector.load %arg4[%c0_7, %c0_8] : memref<32x32xf32, #tpu.memory_space<vmem>>, vector<32x32xf32>
    %cst_9 = arith.constant dense<0.000000e+00> : vector<32x32xf32>
    %10 = tpu.matmul %8, %9, %cst_9 {dimension_numbers = #tpu.dot_dimension_numbers<[1], [0], [0], [1], [0, 0, 1, 1], [], []>} : vector<32x32xf32>, vector<32x32xf32>, vector<32x32xf32> -> vector<32x32xf32>
    %c0_10 = arith.constant 0 : index
    %c0_11 = arith.constant 0 : index
    %11 = vector.load %arg3[%c0_10, %c0_11] : memref<32x32xf32, #tpu.memory_space<vmem>>, vector<32x32xf32>
    %cst_12 = arith.constant dense<0.000000e+00> : vector<32x32xf32>
    %12 = tpu.matmul %11, %6, %cst_12 {dimension_numbers = #tpu.dot_dimension_numbers<[1], [0], [0], [1], [0, 0, 1, 1], [], []>} : vector<32x32xf32>, vector<32x32xf32>, vector<32x32xf32> -> vector<32x32xf32>
    %c0_13 = arith.constant 0 : index
    %c0_14 = arith.constant 0 : index
    %13 = vector.load %arg5[%c0_13, %c0_14] : memref<32x32xf32, #tpu.memory_space<vmem>>, vector<32x32xf32>
    %cst_15 = arith.constant dense<0.000000e+00> : vector<32x32xf32>
    %14 = tpu.matmul %12, %13, %cst_15 {dimension_numbers = #tpu.dot_dimension_numbers<[1], [0], [0], [1], [0, 0, 1, 1], [], []>} : vector<32x32xf32>, vector<32x32xf32>, vector<32x32xf32> -> vector<32x32xf32>
    %15 = arith.mulf %10, %10 : vector<32x32xf32>
    %16 = arith.mulf %14, %14 : vector<32x32xf32>
    %17 = arith.addf %15, %16 : vector<32x32xf32>
    %18 = math.absf %10 : vector<32x32xf32>
    %19 = math.absf %14 : vector<32x32xf32>
    %cst_16 = arith.constant 2.41421366 : f32
    %20 = vector.broadcast %cst_16 : f32 to vector<32x32xf32>
    %21 = arith.mulf %20, %19 : vector<32x32xf32>
    %22 = arith.cmpf oge, %18, %21 : vector<32x32xf32>
    %cst_17 = arith.constant 2.41421366 : f32
    %23 = vector.broadcast %cst_17 : f32 to vector<32x32xf32>
    %24 = arith.mulf %23, %18 : vector<32x32xf32>
    %25 = arith.cmpf oge, %19, %24 : vector<32x32xf32>
    %26 = arith.mulf %10, %14 : vector<32x32xf32>
    %cst_18 = arith.constant 0.000000e+00 : f32
    %27 = vector.broadcast %cst_18 : f32 to vector<32x32xf32>
    %28 = arith.cmpf oge, %26, %27 : vector<32x32xf32>
    %c31_i32 = arith.constant 31 : i32
    %29 = tpu.dynamic_rotate %17 by %c31_i32 dim 0 : vector<32x32xf32>, i32 -> vector<32x32xf32>
    %c1_i32 = arith.constant 1 : i32
    %30 = tpu.dynamic_rotate %17 by %c1_i32 dim 0 : vector<32x32xf32>, i32 -> vector<32x32xf32>
    %c31_i32_19 = arith.constant 31 : i32
    %31 = tpu.dynamic_rotate %29 by %c31_i32_19 dim 1 : vector<32x32xf32>, i32 -> vector<32x32xf32>
    %c1_i32_20 = arith.constant 1 : i32
    %32 = tpu.dynamic_rotate %29 by %c1_i32_20 dim 1 : vector<32x32xf32>, i32 -> vector<32x32xf32>
    %33 = arith.select %28, %31, %32 : vector<32x32xi1>, vector<32x32xf32>
    %c1_i32_21 = arith.constant 1 : i32
    %34 = tpu.dynamic_rotate %30 by %c1_i32_21 dim 1 : vector<32x32xf32>, i32 -> vector<32x32xf32>
    %c31_i32_22 = arith.constant 31 : i32
    %35 = tpu.dynamic_rotate %30 by %c31_i32_22 dim 1 : vector<32x32xf32>, i32 -> vector<32x32xf32>
    %36 = arith.select %28, %34, %35 : vector<32x32xi1>, vector<32x32xf32>
    %37 = arith.select %25, %29, %33 : vector<32x32xi1>, vector<32x32xf32>
    %38 = arith.select %25, %30, %36 : vector<32x32xi1>, vector<32x32xf32>
    %c31_i32_23 = arith.constant 31 : i32
    %39 = tpu.dynamic_rotate %17 by %c31_i32_23 dim 1 : vector<32x32xf32>, i32 -> vector<32x32xf32>
    %40 = arith.select %22, %39, %37 : vector<32x32xi1>, vector<32x32xf32>
    %c1_i32_24 = arith.constant 1 : i32
    %41 = tpu.dynamic_rotate %17 by %c1_i32_24 dim 1 : vector<32x32xf32>, i32 -> vector<32x32xf32>
    %42 = arith.select %22, %41, %38 : vector<32x32xi1>, vector<32x32xf32>
    %43 = arith.cmpf oge, %17, %40 : vector<32x32xf32>
    %44 = arith.cmpf oge, %17, %42 : vector<32x32xf32>
    %45 = arith.andi %43, %44 : vector<32x32xi1>
    %cst_25 = arith.constant 0.000000e+00 : f32
    %46 = vector.broadcast %cst_25 : f32 to vector<32x32xf32>
    %47 = arith.cmpf ogt, %17, %46 : vector<32x32xf32>
    %48 = arith.andi %45, %47 : vector<32x32xi1>
    %c1_i32_26 = arith.constant 1 : i32
    %49 = vector.broadcast %c1_i32_26 : i32 to vector<32x32xi32>
    %50 = arith.cmpi sge, %0, %49 : vector<32x32xi32>
    %c30_i32 = arith.constant 30 : i32
    %51 = vector.broadcast %c30_i32 : i32 to vector<32x32xi32>
    %52 = arith.cmpi sle, %0, %51 : vector<32x32xi32>
    %53 = arith.andi %50, %52 : vector<32x32xi1>
    %c1_i32_27 = arith.constant 1 : i32
    %54 = vector.broadcast %c1_i32_27 : i32 to vector<32x32xi32>
    %55 = arith.cmpi sge, %1, %54 : vector<32x32xi32>
    %56 = arith.andi %53, %55 : vector<32x32xi1>
    %c30_i32_28 = arith.constant 30 : i32
    %57 = vector.broadcast %c30_i32_28 : i32 to vector<32x32xi32>
    %58 = arith.cmpi sle, %1, %57 : vector<32x32xi32>
    %59 = arith.andi %56, %58 : vector<32x32xi1>
    %60 = arith.andi %48, %59 : vector<32x32xi1>
    %cst_29 = arith.constant 0.000000e+00 : f32
    %61 = vector.broadcast %cst_29 : f32 to vector<32x32xf32>
    %62 = arith.select %60, %17, %61 : vector<32x32xi1>, vector<32x32xf32>
    %cst_30 = arith.constant 0.00999999977 : f32
    %63 = vector.broadcast %cst_30 : f32 to vector<32x32xf32>
    %64 = arith.cmpf ogt, %62, %63 : vector<32x32xf32>
    %65 = arith.extui %64 : vector<32x32xi1> to vector<32x32xi32>
    %66 = arith.sitofp %65 : vector<32x32xi32> to vector<32x32xf32>
    %cst_31 = arith.constant 4.000000e-02 : f32
    %67 = vector.broadcast %cst_31 : f32 to vector<32x32xf32>
    %68 = arith.cmpf ogt, %62, %67 : vector<32x32xf32>
    %69 = arith.extui %68 : vector<32x32xi1> to vector<32x32xi32>
    %70 = arith.sitofp %69 : vector<32x32xi32> to vector<32x32xf32>
    %c0_i32 = arith.constant 0 : i32
    %c1_i32_32 = arith.constant 1 : i32
    %71:3 = scf.while (%arg7 = %c0_i32, %arg8 = %70, %arg9 = %c1_i32_32) : (i32, vector<32x32xf32>, i32) -> (i32, vector<32x32xf32>, i32) {
      %c8_i32 = arith.constant 8 : i32
      %75 = arith.cmpi slt, %arg7, %c8_i32 : i32
      %c0_i32_36 = arith.constant 0 : i32
      %76 = arith.cmpi sgt, %arg9, %c0_i32_36 : i32
      %77 = arith.andi %75, %76 : i1
      scf.condition(%77) %arg7, %arg8, %arg9 : i32, vector<32x32xf32>, i32
    } do {
    ^bb0(%arg7: i32, %arg8: vector<32x32xf32>, %arg9: i32):
      %c1_i32_36 = arith.constant 1 : i32
      %75 = tpu.dynamic_rotate %arg8 by %c1_i32_36 dim 0 : vector<32x32xf32>, i32 -> vector<32x32xf32>
      %c31_i32_37 = arith.constant 31 : i32
      %76 = tpu.dynamic_rotate %arg8 by %c31_i32_37 dim 0 : vector<32x32xf32>, i32 -> vector<32x32xf32>
      %77 = arith.maximumf %75, %76 : vector<32x32xf32>
      %78 = arith.maximumf %arg8, %77 : vector<32x32xf32>
      %c1_i32_38 = arith.constant 1 : i32
      %79 = tpu.dynamic_rotate %78 by %c1_i32_38 dim 1 : vector<32x32xf32>, i32 -> vector<32x32xf32>
      %c31_i32_39 = arith.constant 31 : i32
      %80 = tpu.dynamic_rotate %78 by %c31_i32_39 dim 1 : vector<32x32xf32>, i32 -> vector<32x32xf32>
      %81 = arith.maximumf %79, %80 : vector<32x32xf32>
      %82 = arith.maximumf %78, %81 : vector<32x32xf32>
      %83 = arith.mulf %82, %66 : vector<32x32xf32>
      %c1_i32_40 = arith.constant 1 : i32
      %84 = tpu.dynamic_rotate %83 by %c1_i32_40 dim 0 : vector<32x32xf32>, i32 -> vector<32x32xf32>
      %c31_i32_41 = arith.constant 31 : i32
      %85 = tpu.dynamic_rotate %83 by %c31_i32_41 dim 0 : vector<32x32xf32>, i32 -> vector<32x32xf32>
      %86 = arith.maximumf %84, %85 : vector<32x32xf32>
      %87 = arith.maximumf %83, %86 : vector<32x32xf32>
      %c1_i32_42 = arith.constant 1 : i32
      %88 = tpu.dynamic_rotate %87 by %c1_i32_42 dim 1 : vector<32x32xf32>, i32 -> vector<32x32xf32>
      %c31_i32_43 = arith.constant 31 : i32
      %89 = tpu.dynamic_rotate %87 by %c31_i32_43 dim 1 : vector<32x32xf32>, i32 -> vector<32x32xf32>
      %90 = arith.maximumf %88, %89 : vector<32x32xf32>
      %91 = arith.maximumf %87, %90 : vector<32x32xf32>
      %92 = arith.mulf %91, %66 : vector<32x32xf32>
      %c1_i32_44 = arith.constant 1 : i32
      %93 = tpu.dynamic_rotate %92 by %c1_i32_44 dim 0 : vector<32x32xf32>, i32 -> vector<32x32xf32>
      %c31_i32_45 = arith.constant 31 : i32
      %94 = tpu.dynamic_rotate %92 by %c31_i32_45 dim 0 : vector<32x32xf32>, i32 -> vector<32x32xf32>
      %95 = arith.maximumf %93, %94 : vector<32x32xf32>
      %96 = arith.maximumf %92, %95 : vector<32x32xf32>
      %c1_i32_46 = arith.constant 1 : i32
      %97 = tpu.dynamic_rotate %96 by %c1_i32_46 dim 1 : vector<32x32xf32>, i32 -> vector<32x32xf32>
      %c31_i32_47 = arith.constant 31 : i32
      %98 = tpu.dynamic_rotate %96 by %c31_i32_47 dim 1 : vector<32x32xf32>, i32 -> vector<32x32xf32>
      %99 = arith.maximumf %97, %98 : vector<32x32xf32>
      %100 = arith.maximumf %96, %99 : vector<32x32xf32>
      %101 = arith.mulf %100, %66 : vector<32x32xf32>
      %c1_i32_48 = arith.constant 1 : i32
      %102 = tpu.dynamic_rotate %101 by %c1_i32_48 dim 0 : vector<32x32xf32>, i32 -> vector<32x32xf32>
      %c31_i32_49 = arith.constant 31 : i32
      %103 = tpu.dynamic_rotate %101 by %c31_i32_49 dim 0 : vector<32x32xf32>, i32 -> vector<32x32xf32>
      %104 = arith.maximumf %102, %103 : vector<32x32xf32>
      %105 = arith.maximumf %101, %104 : vector<32x32xf32>
      %c1_i32_50 = arith.constant 1 : i32
      %106 = tpu.dynamic_rotate %105 by %c1_i32_50 dim 1 : vector<32x32xf32>, i32 -> vector<32x32xf32>
      %c31_i32_51 = arith.constant 31 : i32
      %107 = tpu.dynamic_rotate %105 by %c31_i32_51 dim 1 : vector<32x32xf32>, i32 -> vector<32x32xf32>
      %108 = arith.maximumf %106, %107 : vector<32x32xf32>
      %109 = arith.maximumf %105, %108 : vector<32x32xf32>
      %110 = arith.mulf %109, %66 : vector<32x32xf32>
      %c1_i32_52 = arith.constant 1 : i32
      %111 = tpu.dynamic_rotate %110 by %c1_i32_52 dim 0 : vector<32x32xf32>, i32 -> vector<32x32xf32>
      %c31_i32_53 = arith.constant 31 : i32
      %112 = tpu.dynamic_rotate %110 by %c31_i32_53 dim 0 : vector<32x32xf32>, i32 -> vector<32x32xf32>
      %113 = arith.maximumf %111, %112 : vector<32x32xf32>
      %114 = arith.maximumf %110, %113 : vector<32x32xf32>
      %c1_i32_54 = arith.constant 1 : i32
      %115 = tpu.dynamic_rotate %114 by %c1_i32_54 dim 1 : vector<32x32xf32>, i32 -> vector<32x32xf32>
      %c31_i32_55 = arith.constant 31 : i32
      %116 = tpu.dynamic_rotate %114 by %c31_i32_55 dim 1 : vector<32x32xf32>, i32 -> vector<32x32xf32>
      %117 = arith.maximumf %115, %116 : vector<32x32xf32>
      %118 = arith.maximumf %114, %117 : vector<32x32xf32>
      %119 = arith.mulf %118, %66 : vector<32x32xf32>
      %c1_i32_56 = arith.constant 1 : i32
      %120 = tpu.dynamic_rotate %119 by %c1_i32_56 dim 0 : vector<32x32xf32>, i32 -> vector<32x32xf32>
      %c31_i32_57 = arith.constant 31 : i32
      %121 = tpu.dynamic_rotate %119 by %c31_i32_57 dim 0 : vector<32x32xf32>, i32 -> vector<32x32xf32>
      %122 = arith.maximumf %120, %121 : vector<32x32xf32>
      %123 = arith.maximumf %119, %122 : vector<32x32xf32>
      %c1_i32_58 = arith.constant 1 : i32
      %124 = tpu.dynamic_rotate %123 by %c1_i32_58 dim 1 : vector<32x32xf32>, i32 -> vector<32x32xf32>
      %c31_i32_59 = arith.constant 31 : i32
      %125 = tpu.dynamic_rotate %123 by %c31_i32_59 dim 1 : vector<32x32xf32>, i32 -> vector<32x32xf32>
      %126 = arith.maximumf %124, %125 : vector<32x32xf32>
      %127 = arith.maximumf %123, %126 : vector<32x32xf32>
      %128 = arith.mulf %127, %66 : vector<32x32xf32>
      %c1_i32_60 = arith.constant 1 : i32
      %129 = tpu.dynamic_rotate %128 by %c1_i32_60 dim 0 : vector<32x32xf32>, i32 -> vector<32x32xf32>
      %c31_i32_61 = arith.constant 31 : i32
      %130 = tpu.dynamic_rotate %128 by %c31_i32_61 dim 0 : vector<32x32xf32>, i32 -> vector<32x32xf32>
      %131 = arith.maximumf %129, %130 : vector<32x32xf32>
      %132 = arith.maximumf %128, %131 : vector<32x32xf32>
      %c1_i32_62 = arith.constant 1 : i32
      %133 = tpu.dynamic_rotate %132 by %c1_i32_62 dim 1 : vector<32x32xf32>, i32 -> vector<32x32xf32>
      %c31_i32_63 = arith.constant 31 : i32
      %134 = tpu.dynamic_rotate %132 by %c31_i32_63 dim 1 : vector<32x32xf32>, i32 -> vector<32x32xf32>
      %135 = arith.maximumf %133, %134 : vector<32x32xf32>
      %136 = arith.maximumf %132, %135 : vector<32x32xf32>
      %137 = arith.mulf %136, %66 : vector<32x32xf32>
      %c1_i32_64 = arith.constant 1 : i32
      %138 = tpu.dynamic_rotate %137 by %c1_i32_64 dim 0 : vector<32x32xf32>, i32 -> vector<32x32xf32>
      %c31_i32_65 = arith.constant 31 : i32
      %139 = tpu.dynamic_rotate %137 by %c31_i32_65 dim 0 : vector<32x32xf32>, i32 -> vector<32x32xf32>
      %140 = arith.maximumf %138, %139 : vector<32x32xf32>
      %141 = arith.maximumf %137, %140 : vector<32x32xf32>
      %c1_i32_66 = arith.constant 1 : i32
      %142 = tpu.dynamic_rotate %141 by %c1_i32_66 dim 1 : vector<32x32xf32>, i32 -> vector<32x32xf32>
      %c31_i32_67 = arith.constant 31 : i32
      %143 = tpu.dynamic_rotate %141 by %c31_i32_67 dim 1 : vector<32x32xf32>, i32 -> vector<32x32xf32>
      %144 = arith.maximumf %142, %143 : vector<32x32xf32>
      %145 = arith.maximumf %141, %144 : vector<32x32xf32>
      %146 = arith.mulf %145, %66 : vector<32x32xf32>
      %147 = arith.subf %146, %arg8 : vector<32x32xf32>
      %148 = vector.shape_cast %147 : vector<32x32xf32> to vector<1x32x32xf32>
      %cst_68 = arith.constant dense<0xFF800000> : vector<1xf32>
      %149 = vector.multi_reduction <maximumf>, %148, %cst_68 [1, 2] : vector<1x32x32xf32> to vector<1xf32>
      %150 = vector.shape_cast %149 : vector<1xf32> to vector<1x1x1xf32>
      %151 = vector.extract %150[0, 0, 0] : f32 from vector<1x1x1xf32>
      %cst_69 = arith.constant 0.000000e+00 : f32
      %152 = arith.cmpf ogt, %151, %cst_69 : f32
      %153 = arith.extui %152 : i1 to i32
      %c1_i32_70 = arith.constant 1 : i32
      %154 = arith.addi %arg7, %c1_i32_70 : i32
      scf.yield %154, %146, %153 : i32, vector<32x32xf32>, i32
    }
    %c0_33 = arith.constant 0 : index
    %c0_34 = arith.constant 0 : index
    %c0_35 = arith.constant 0 : index
    %72 = vector.load %arg6[%c0_33, %c0_34, %c0_35] : memref<1x32x32xf32, #tpu.memory_space<vmem>>, vector<1x32x32xf32>
    %73 = vector.shape_cast %72 : vector<1x32x32xf32> to vector<32x32xf32>
    %74 = vector.shape_cast %71#1 : vector<32x32xf32> to vector<1x32x32xf32>
    tpu.vector_store %arg6[%c0_33, %c0_34, %c0_35], %74 {strides = array<i32>} : memref<1x32x32xf32, #tpu.memory_space<vmem>>, vector<1x32x32xf32>,
    return
  }
  func.func @transform_0(%arg0: i32) -> (i32, i32, i32, i32) {
    %c0_i32 = arith.constant 0 : i32
    %c0_i32_0 = arith.constant 0 : i32
    %c0_i32_1 = arith.constant 0 : i32
    %c0_i32_2 = arith.constant 0 : i32
    return %arg0, %c0_i32, %c0_i32_0, %c0_i32_1 : i32, i32, i32, i32
  }
  func.func @transform_1(%arg0: i32) -> (i32, i32) {
    %c0_i32 = arith.constant 0 : i32
    %c0_i32_0 = arith.constant 0 : i32
    %c0_i32_1 = arith.constant 0 : i32
    return %c0_i32, %c0_i32_0 : i32, i32
  }
  func.func @transform_2(%arg0: i32) -> (i32, i32) {
    %c0_i32 = arith.constant 0 : i32
    %c0_i32_0 = arith.constant 0 : i32
    %c0_i32_1 = arith.constant 0 : i32
    return %c0_i32, %c0_i32_0 : i32, i32
  }
  func.func @transform_3(%arg0: i32) -> (i32, i32) {
    %c0_i32 = arith.constant 0 : i32
    %c0_i32_0 = arith.constant 0 : i32
    %c0_i32_1 = arith.constant 0 : i32
    return %c0_i32, %c0_i32_0 : i32, i32
  }
  func.func @transform_4(%arg0: i32) -> (i32, i32) {
    %c0_i32 = arith.constant 0 : i32
    %c0_i32_0 = arith.constant 0 : i32
    %c0_i32_1 = arith.constant 0 : i32
    return %c0_i32, %c0_i32_0 : i32, i32
  }
  func.func @transform_5(%arg0: i32) -> (i32, i32, i32) {
    %c0_i32 = arith.constant 0 : i32
    %c0_i32_0 = arith.constant 0 : i32
    %c0_i32_1 = arith.constant 0 : i32
    return %arg0, %c0_i32, %c0_i32_0 : i32, i32, i32
  }
}

</mosaic_0001>

<bundles_post_ra>
// kernel: run.1
= control target key start
LH: loop header
LB: loop body
LE: loop exit
PB: predicated region body
PF: predicated region fallthrough
CT: control target
= control target key end

     0   :  { %10 = vsyncpa [#allocation3], 0  ;;  %s2610_s0 = inlined_call_operand.hbm [shape: f32[1,3,32,32], index: 0, kind: input, shape index: {}]   ;;  %s2611_s1 = inlined_call_operand.hbm [shape: f32[32,32], index: 1, kind: input, shape index: {}]   ;;  %s2612_s2 = inlined_call_operand.hbm [shape: f32[32,32], index: 2, kind: input, shape index: {}]   ;;  %s2613_s3 = inlined_call_operand.hbm [shape: f32[32,32], index: 3, kind: input, shape index: {}]   ;;  %s2614_s4 = inlined_call_operand.hbm [shape: f32[32,32], index: 4, kind: input, shape index: {}]   ;;  %s2615_s5 = inlined_call_operand.hbm [shape: f32[1,32,32], index: 5, kind: output, shape index: {}]  }
   0x1   :  { %11 = vsyncpa [#allocation6], 0 }
   0x2   :  { %12 = vsyncpa [#allocation9], 0 }
   0x3   :  { %13 = vsyncpa [#allocation4], 0  ;;  %s31_s20 = sshll.u32 %s2611_s1, 4  ;;  %s1740_s21 = smov [#allocation5]   ;;  %s32_s20 = int_to_ptr.hbm [resolvable:$true] %s31_s20 }
   0x4   :  { %s33_s22 = sshll.u32 %s1740_s21, 4  ;;  %s57_s25 = sshll.u32 %s2613_s3, 4  ;;  %s34_s22 = int_to_ptr.vmem [resolvable:$true] %s33_s22  ;;  %s58_s25 = int_to_ptr.hbm [resolvable:$true] %s57_s25 }
   0x5   :  { %s1741_s26 = smov 128   ;;  %s1742_s27 = smov 8  }
   0x6   :  { %39 = dma.hbm_to_vmem [thread:$0]  %s32_s20, 512, %s34_s22, [#allocation6], %s1741_s26, %s1741_s26, %s1742_s27  }
   0x7   :  { %s1743_s28 = smov [#allocation8]   ;;  %s18_s1 = sshll.u32 %s2610_s0, 4  ;;  %s19_s1 = int_to_ptr.hbm [resolvable:$true] %s18_s1 }
   0x8   :  { %s59_s29 = sshll.u32 %s1743_s28, 4  ;;  %s44_s8 = sshll.u32 %s2612_s2, 4  ;;  %s60_s29 = int_to_ptr.vmem [resolvable:$true] %s59_s29  ;;  %s45_s8 = int_to_ptr.hbm [resolvable:$true] %s44_s8 }
   0x9   :  { %65 = dma.hbm_to_vmem [thread:$0]  %s58_s25, 512, %s60_s29, [#allocation9], %s1741_s26, %s1741_s26, %s1742_s27  }
   0xa   :  { %s1744_s9 = smov [#allocation2]   ;;  %s1745_s11 = smov [#allocation7]  }
   0xb   :  { %s20_s10 = sshll.u32 %s1744_s9, 4  ;;  %s46_s0 = sshll.u32 %s1745_s11, 4  ;;  %s21_s10 = int_to_ptr.vmem [resolvable:$true] %s20_s10  ;;  %s47_s0 = int_to_ptr.vmem [resolvable:$true] %s46_s0 }
   0xc   :  { %26 = dma.hbm_to_vmem [thread:$0]  %s19_s1, 1536, %s21_s10, [#allocation3], %s1741_s26, %s1741_s26, %s1742_s27  }
   0xd   :  { %s70_s14 = sshll.u32 %s2614_s4, 4  ;;  %s1746_s2 = smov [#allocation10]   ;;  %s71_s14 = int_to_ptr.hbm [resolvable:$true] %s70_s14 }
   0xe   :  { %52 = dma.hbm_to_vmem [thread:$0]  %s45_s8, 512, %s47_s0, [#allocation6], %s1741_s26, %s1741_s26, %s1742_s27  }
   0xf   :  { %s72_s15 = sshll.u32 %s1746_s2, 4  ;;  %s73_s15 = int_to_ptr.vmem [resolvable:$true] %s72_s15 }
  0x10   :  { %78 = dma.hbm_to_vmem [thread:$0]  %s71_s14, 512, %s73_s15, [#allocation9], %s1741_s26, %s1741_s26, %s1742_s27  }
  0x11   :  { %1712 = dma.done.wait [#allocation3], 1536  }
  0x12   :  { %1713 = vsyncadd [#allocation3], 4294965760 }
  0x13   :  { %1714 = dma.done.wait [#allocation6], 1024  }
  0x14   :  { %1715 = vsyncadd [#allocation6], 4294966272 }
  0x15   :  { %1716 = dma.done.wait [#allocation9], 1024  }
  0x16   :  { %1717 = vsyncadd [#allocation9], 4294966272  ;;  %v1747_v0 = vmov 3.0   ;;  %vm2616_vm0 = vcmask 261120   ;;  %v109_v2 = vld [vmem:[#allocation2 + $0x18] sm:$0xff]  ;;  %v108_v8 = vld [vmem:[#allocation2 + $0x10] sm:$0xff] }
  0x17   :  { %1546 = vrcp.f32 %v1747_v0  ;;  %v113_v3 = vld [vmem:[#allocation2 + $0x38] sm:$0xff]  ;;  %v134_v5 = vsel %vm2616_vm0, %v109_v2, 0.0  ;;  %v112_v9 = vld [vmem:[#allocation2 + $0x30] sm:$0xff]  ;;  %v129_v13 = vsel %vm2616_vm0, %v108_v8, 0.0  ;;  %v107_v15 = vld [vmem:[#allocation2 + $0x8] sm:$0xff]  ;;  %s1748_s4 = smov 32  }
  0x18   :  { %v117_v4 = vld [vmem:[#allocation2 + $0x58] sm:$0xff]  ;;  %v135_v6 = vsel %vm2616_vm0, %v113_v3, 0.0  ;;  %v116_v12 = vld [vmem:[#allocation2 + $0x50] sm:$0xff]  ;;  %v130_v14 = vsel %vm2616_vm0, %v112_v9, 0.0  ;;  %v111_v16 = vld [vmem:[#allocation2 + $0x28] sm:$0xff]  ;;  %v124_v21 = vsel %vm2616_vm0, %v107_v15, 0.0 }
  0x19   :  { %v136_v10 = vadd.f32 %v135_v6, %v134_v5  ;;  %v137_v11 = vsel %vm2616_vm0, %v117_v4, 0.0  ;;  %v131_v18 = vadd.f32 %v130_v14, %v129_v13  ;;  %v132_v19 = vsel %vm2616_vm0, %v116_v12, 0.0  ;;  %v115_v20 = vld [vmem:[#allocation2 + $0x48] sm:$0xff]  ;;  %v106_v22 = vld [vmem:[#allocation2] sm:$0xff]  ;;  %v288_v41 = vld [vmem:[#allocation10 + $0x18] sm:$0xff]  ;;  %s1749_s16 = smov 127  }
  0x1a   :  { %v110_v23 = vld [vmem:[#allocation2 + $0x20] sm:$0xff]  ;;  %v125_v24 = vsel %vm2616_vm0, %v111_v16, 0.0  ;;  %v119_v26 = vsel %vm2616_vm0, %v106_v22, 0.0  ;;  %v127_v29 = vsel %vm2616_vm0, %v115_v20, 0.0  ;;  %v287_v43 = vld [vmem:[#allocation10 + $0x10] sm:$0xff]  ;;  %v198_v44 = vld [vmem:[#allocation8 + $0x18] sm:$0xff]  ;;  %313 = vmatpush.msra.mxu3 %v288_v41  ;;  %v99_v16 = vlaneseq }
  0x1b   :  { %v114_v25 = vld [vmem:[#allocation2 + $0x40] sm:$0xff]  ;;  %v126_v28 = vadd.f32 %v125_v24, %v124_v21  ;;  %v120_v30 = vsel %vm2616_vm0, %v110_v23, 0.0  ;;  %v138_v31 = vadd.f32 %v137_v11, %v136_v10  ;;  %v133_v32 = vadd.f32 %v132_v19, %v131_v18  ;;  %223 = vmatpush.msra.mxu1 %v198_v44  ;;  %v197_v45 = vld [vmem:[#allocation8 + $0x10] sm:$0xff]  ;;  %v286_v47 = vld [vmem:[#allocation10 + $0x8] sm:$0xff]  ;;  %s1750_s17 = smov 97   ;;  %s2164_s18 = smov 0  }
  0x1c   :  { %v121_v33 = vadd.f32 %v120_v30, %v119_v26  ;;  %v122_v35 = vsel %vm2616_vm0, %v114_v25, 0.0  ;;  %314 = vmatpush.msra.mxu3 %v287_v43  ;;  %v240_v48 = vld [vmem:[#allocation7] sm:$0xff]  ;;  %v241_v50 = vld [vmem:[#allocation7 + $0x8] sm:$0xff]  ;;  %v242_v52 = vld [vmem:[#allocation7 + $0x10] sm:$0xff]  ;;  %v1859_v22 = vshrl.u32 %v99_v16, 7  ;;  %vm2617_vm12 = vcmask 1047808  }
  0x1d   :  { %v1547_v1 = vpop.eup %1546  ;;  %v128_v36 = vadd.f32 %v127_v29, %v126_v28  ;;  %224 = vmatpush.msra.mxu1 %v197_v45  ;;  %v150_v49 = vld [vmem:[#allocation5] sm:$0xff]  ;;  %v151_v51 = vld [vmem:[#allocation5 + $0x8] sm:$0xff]  ;;  %v152_v53 = vld [vmem:[#allocation5 + $0x10] sm:$0xff] }
  0x1e   :  { %v140_v7 = vmul.f32 3.0, %v1547_v1  ;;  %vm144_vm1 = vweird.f32 %v1547_v1  ;;  %v123_v40 = vadd.f32 %v122_v35, %v121_v33  ;;  %315 = vmatpush.msra.mxu3 %v286_v47  ;;  %v243_v54 = vld [vmem:[#allocation7 + $0x18] sm:$0xff]  ;;  %v285_v56 = vld [vmem:[#allocation10] sm:$0xff]  ;;  %v196_v57 = vld [vmem:[#allocation8 + $0x8] sm:$0xff]  ;;  %vm2619_vm5 = vcmp.lt.s32.totalorder %v1859_v22, 1 }
  0x1f   :  { %v153_v55 = vld [vmem:[#allocation5 + $0x18] sm:$0xff]  ;;  %v195_v58 = vld [vmem:[#allocation8] sm:$0xff]  ;;  %225 = vmatpush.msra.mxu1 %v196_v57  ;;  %vm2618_vm6 = vcmp.lt.s32.totalorder %v1859_v22, 7 }
  0x20   :  { %v141_v17 = vsub.f32 1.0, %v140_v7  ;;  %316 = vmatpush.msra.mxu3 %v285_v56 }
  0x21   :  { %226 = vmatpush.msra.mxu1 %v195_v58 }
  0x22   :  { %v142_v27 = vmul.f32 %v1547_v1, %v141_v17 }
  0x24   :  { %v143_v34 = vadd.f32 %v1547_v1, %v142_v27 }
  0x26   :  { %v145_v37 = vsel %vm144_vm1, %v1547_v1, %v143_v34  ;;  %v2633_v34 = vmov 0 }
  0x27   :  { %v149_v38 = vmul.f32 %v145_v37, %v138_v31  ;;  %v148_v39 = vmul.f32 %v145_v37, %v133_v32  ;;  %v147_v42 = vmul.f32 %v145_v37, %v128_v36  ;;  %v146_v46 = vmul.f32 %v145_v37, %v123_v40 }
  0x29   :  { %268 = vmatpush.msra.mxu2 %v149_v38  ;;  %178 = vmatpush.msra.mxu0 %v149_v38 }
  0x2b   :  { %269 = vmatpush.msra.mxu2 %v148_v39  ;;  %179 = vmatpush.msra.mxu0 %v148_v39 }
  0x2d   :  { %270 = vmatpush.msra.mxu2 %v147_v42  ;;  %180 = vmatpush.msra.mxu0 %v147_v42 }
  0x2f   :  { %271 = vmatpush.msra.mxu2 %v146_v46  ;;  %181 = vmatpush.msra.mxu0 %v146_v46 }
  0x30   :  { %1472 = vmatmul.msk.f32.vlgmr.msra.gmra.mxu2 %vm2616_vm0, %v240_v48  ;;  %1464 = vmatmul.msk.f32.vlgmr.msra.gmra.mxu0 %vm2616_vm0, %v150_v49 }
  0x38   :  { %1473 = vmatmul.msk.f32.gmra.mxu2 %vm2616_vm0, %v241_v50  ;;  %1465 = vmatmul.msk.f32.gmra.mxu0 %vm2616_vm0, %v151_v51 }
  0x40   :  { %1474 = vmatmul.msk.f32.gmra.mxu2 %vm2616_vm0, %v242_v52  ;;  %1466 = vmatmul.msk.f32.gmra.mxu0 %vm2616_vm0, %v152_v53 }
  0x48   :  { %1475 = vmatmul.msk.f32.gmra.mxu2 %vm2616_vm0, %v243_v54  ;;  %1467 = vmatmul.msk.f32.gmra.mxu0 %vm2616_vm0, %v153_v55 }
  0xad   :  { %v183_v59 = vpop.f32.mrf.mxu0 }
  0xae   :  { %1468 = vmatmul.msk.f32.vlgmr.msra.gmra.mxu1 %vm2616_vm0, %v183_v59 }
  0xb3   :  { %v273_v60 = vpop.f32.mrf.mxu2 }
  0xb4   :  { %1476 = vmatmul.msk.f32.vlgmr.msra.gmra.mxu3 %vm2616_vm0, %v273_v60 }
  0xb5   :  { %v186_v61 = vpop.f32.mrf.mxu0 }
  0xb6   :  { %1469 = vmatmul.msk.f32.gmra.mxu1 %vm2616_vm0, %v186_v61  ;;  %v2641_v61 = vmov 0 }
  0xbb   :  { %v276_v62 = vpop.f32.mrf.mxu2 }
  0xbc   :  { %1477 = vmatmul.msk.f32.gmra.mxu3 %vm2616_vm0, %v276_v62 }
  0xbd   :  { %v189_v63 = vpop.f32.mrf.mxu0 }
  0xbe   :  { %1470 = vmatmul.msk.f32.gmra.mxu1 %vm2616_vm0, %v189_v63 }
  0xc3   :  { %v279_v0 = vpop.f32.mrf.mxu2 }
  0xc4   :  { %1478 = vmatmul.msk.f32.gmra.mxu3 %vm2616_vm0, %v279_v0 }
  0xc5   :  { %v192_v1 = vpop.f32.mrf.mxu0 }
  0xc6   :  { %1471 = vmatmul.msk.f32.gmra.mxu1 %vm2616_vm0, %v192_v1 }
  0xcb   :  { %v282_v2 = vpop.f32.mrf.mxu2 }
  0xcc   :  { %1479 = vmatmul.msk.f32.gmra.mxu3 %vm2616_vm0, %v282_v2 }
 0x12b   :  { %v228_v3 = vpop.f32.mrf.mxu1 }
 0x12c   :  { %v342_v4 = vand.u32 2147483647, %v228_v3  ;;  %v330_v6 = vmul.f32 %v228_v3, %v228_v3 }
 0x12e   :  { %v358_v7 = vmul.f32 2.4142137, %v342_v4 }
 0x133   :  { %v231_v5 = vpop.f32.mrf.mxu1 }
 0x134   :  { %v343_v15 = vand.u32 2147483647, %v231_v5  ;;  %v331_v19 = vmul.f32 %v231_v5, %v231_v5 }
 0x136   :  { %v359_v20 = vmul.f32 2.4142137, %v343_v15 }
 0x137   :  { %v318_v8 = vpop.f32.mrf.mxu3 }
 0x138   :  { %v334_v9 = vmul.f32 %v318_v8, %v318_v8  ;;  %v346_v10 = vand.u32 2147483647, %v318_v8  ;;  %v1844_v11 = vmul.f32 %v318_v8, %v228_v3 }
 0x13a   :  { %v1846_v12 = vadd.f32 %v334_v9, %v330_v6  ;;  %v350_v13 = vmul.f32 2.4142137, %v346_v10  ;;  %vm1848_vm2 = vcmp.ge.f32.partialorder %v346_v10, %v358_v7  ;;  %vm2621_vm14 = vcmp.ge.f32.partialorder %v1844_v11, 0.0 }
 0x13b   :  { %v234_v18 = vpop.f32.mrf.mxu1 }
 0x13c   :  { %vm1852_vm3 = vcmp.ge.f32.partialorder %v342_v4, %v350_v13  ;;  %513 = vrot.lane.b32.xlu1 %v1846_v12, %s1748_s4  ;;  %v344_v29 = vand.u32 2147483647, %v234_v18  ;;  %v383_v30 = vrot.slane %v1846_v12, 7  ;;  %v374_v32 = vrot.slane %v1846_v12, 1 }
 0x13d   :  { %v332_v35 = vmul.f32 %v234_v18, %v234_v18 }
 0x13e   :  { %v360_v36 = vmul.f32 2.4142137, %v344_v29 }
 0x13f   :  { %v321_v21 = vpop.f32.mrf.mxu3 }
 0x140   :  { %v335_v23 = vmul.f32 %v321_v21, %v321_v21  ;;  %v347_v24 = vand.u32 2147483647, %v321_v21  ;;  %v1861_v25 = vmul.f32 %v321_v21, %v231_v5 }
 0x142   :  { %v1863_v26 = vadd.f32 %v335_v23, %v331_v19  ;;  %v351_v27 = vmul.f32 2.4142137, %v347_v24  ;;  %vm1865_vm4 = vcmp.ge.f32.partialorder %v347_v24, %v359_v20  ;;  %vm371_vm13 = vcmp.ge.f32.partialorder %v1861_v25, 0.0 }
 0x143   :  { %v237_v40 = vpop.f32.mrf.mxu1 }
 0x144   :  { %516 = vrot.lane.b32.xlu2 %v1863_v26, %s1748_s4  ;;  %v384_v31 = vrot.slane %v1863_v26, 7  ;;  %v375_v33 = vrot.slane %v1863_v26, 1  ;;  %vm1877_vm7 = vcmp.ge.f32.partialorder %v343_v15, %v351_v27  ;;  %v345_v47 = vand.u32 2147483647, %v237_v40 }
 0x145   :  { %v2634_v34 = vsel %vm1877_vm7, 4294967295, %v2633_v34  ;;  %v333_v50 = vmul.f32 %v237_v40, %v237_v40 }
 0x146   :  { %v1883_v37 = vsel %vm2619_vm5, %v383_v30, %v384_v31  ;;  %v1887_v38 = vsel %vm2618_vm6, %v374_v32, %v375_v33  ;;  %v361_v51 = vmul.f32 2.4142137, %v345_v47 }
 0x147   :  { %v324_v39 = vpop.f32.mrf.mxu3  ;;  %452 = vrot.lane.b32.xlu1 %v1883_v37, %s1748_s4  ;;  %393 = vrot.lane.b32.xlu0 %v1887_v38, %s1748_s4 }
 0x148   :  { %v336_v41 = vmul.f32 %v324_v39, %v324_v39  ;;  %v348_v42 = vand.u32 2147483647, %v324_v39  ;;  %v1893_v43 = vmul.f32 %v324_v39, %v234_v18 }
 0x14a   :  { %v1895_v44 = vadd.f32 %v336_v41, %v332_v35  ;;  %v352_v45 = vmul.f32 2.4142137, %v348_v42  ;;  %vm1897_vm8 = vcmp.ge.f32.partialorder %v348_v42, %v360_v36  ;;  %vm372_vm15 = vcmp.ge.f32.partialorder %v1893_v43, 0.0 }
 0x14c   :  { %v385_v48 = vrot.slane %v1895_v44, 7  ;;  %vm1902_vm9 = vcmp.ge.f32.partialorder %v344_v29, %v352_v45  ;;  %v376_v60 = vrot.slane %v1895_v44, 1 }
 0x14e   :  { %v1908_v52 = vsel %vm2619_vm5, %v384_v31, %v385_v48  ;;  %v1931_v62 = vsel %vm2618_vm6, %v375_v33, %v376_v60 }
 0x14f   :  { %v327_v53 = vpop.f32.mrf.mxu3  ;;  %519 = vrot.lane.b32.xlu0 %v1895_v44, %s1748_s4  ;;  %455 = vrot.lane.b32.xlu2 %v1908_v52, %s1748_s4 }
 0x150   :  { %v337_v54 = vmul.f32 %v327_v53, %v327_v53  ;;  %v349_v55 = vand.u32 2147483647, %v327_v53  ;;  %v1914_v56 = vmul.f32 %v327_v53, %v237_v40 }
 0x152   :  { %v1916_v57 = vadd.f32 %v337_v54, %v333_v50  ;;  %v353_v58 = vmul.f32 2.4142137, %v349_v55  ;;  %vm1918_vm10 = vcmp.ge.f32.partialorder %v349_v55, %v361_v51  ;;  %vm2620_vm1 = vcmp.ge.f32.partialorder %v1914_v56, 0.0 }
 0x154   :  { %vm1923_vm11 = vcmp.ge.f32.partialorder %v345_v47, %v353_v58  ;;  %522 = vrot.lane.b32.xlu1 %v1916_v57, %s1748_s4  ;;  %v377_v63 = vrot.slane %v1916_v57, 1  ;;  %v386_v0 = vrot.slane %v1916_v57, 7 }
 0x155   :  { %v2642_v61 = vsel %vm1923_vm11, 4294967295, %v2641_v61 }
 0x156   :  { %v1939_v1 = vsel %vm2618_vm6, %v376_v60, %v377_v63  ;;  %v1945_v2 = vsel %vm2619_vm5, %v386_v0, %v383_v30  ;;  %v1951_v3 = vsel %vm2618_vm6, %v377_v63, %v374_v32  ;;  %v1957_v4 = vsel %vm2619_vm5, %v385_v48, %v386_v0 }
 0x157   :  { %396 = vrot.lane.b32.xlu0 %v1931_v62, %s1748_s4  ;;  %vm587_vm5 = vcmp.gt.f32.partialorder %v1895_v44, 0.0 }
 0x15c   :  { %399 = vrot.lane.b32.xlu1 %v1939_v1, %s1748_s4 }
 0x15f   :  { %449 = vrot.lane.b32.xlu0 %v1945_v2, %s1748_s4 }
 0x164   :  { %402 = vrot.lane.b32.xlu1 %v1951_v3, %s1748_s4 }
 0x167   :  { %458 = vrot.lane.b32.xlu0 %v1957_v4, %s1748_s4 }
 0x19e   :  { %v517_v5 = vpop.permute.xlu2 %516 }
 0x19f   :  { %v518_v6 = vsel %vm2617_vm12, %v517_v5, %v1863_v26 }
 0x1a0   :  { %527 = vrot.lane.b32.xlu0 %v518_v6, %s1748_s4 }
 0x1a9   :  { %v456_v7 = vpop.permute.xlu2 %455 }
 0x1aa   :  { %v457_v8 = vsel %vm2617_vm12, %v456_v7, %v1908_v52 }
 0x1ab   :  { %465 = vrot.lane.b32.xlu0 %v457_v8, %s1748_s4 }
 0x1ae   :  { %v514_v9 = vpop.permute.xlu1 %513 }
 0x1af   :  { %v515_v10 = vsel %vm2617_vm12, %v514_v9, %v1846_v12 }
 0x1b0   :  { %525 = vrot.lane.b32.xlu2 %v515_v10, %s1748_s4 }
 0x1b9   :  { %v394_v13 = vpop.permute.xlu0 %393  ;;  %v453_v18 = vpop.permute.xlu1 %452 }
 0x1ba   :  { %v395_v15 = vsel %vm2617_vm12, %v394_v13, %v1887_v38  ;;  %v454_v20 = vsel %vm2617_vm12, %v453_v18, %v1883_v37 }
 0x1bb   :  { %405 = vrot.lane.b32.xlu2 %v395_v15, %s1748_s4 }
 0x1c1   :  { %v520_v19 = vpop.permute.xlu0 %519 }
 0x1c2   :  { %v521_v21 = vsel %vm2617_vm12, %v520_v19, %v1895_v44 }
 0x1c3   :  { %463 = vrot.lane.b32.xlu2 %v454_v20, %s1748_s4  ;;  %529 = vrot.lane.b32.xlu1 %v521_v21, %s1748_s4 }
 0x1c6   :  { %v523_v23 = vpop.permute.xlu1 %522 }
 0x1c7   :  { %v524_v31 = vsel %vm2617_vm12, %v523_v23, %v1916_v57 }
 0x1c9   :  { %v397_v24 = vpop.permute.xlu0 %396 }
 0x1ca   :  { %v398_v27 = vsel %vm2617_vm12, %v397_v24, %v1931_v62 }
 0x1cb   :  { %407 = vrot.lane.b32.xlu2 %v398_v27, %s1748_s4 }
 0x1ce   :  { %v400_v29 = vpop.permute.xlu1 %399 }
 0x1cf   :  { %v401_v40 = vsel %vm2617_vm12, %v400_v29, %v1939_v1 }
 0x1d1   :  { %v450_v30 = vpop.permute.xlu0 %449 }
 0x1d2   :  { %v451_v32 = vsel %vm2617_vm12, %v450_v30, %v1945_v2 }
 0x1d3   :  { %531 = vrot.lane.b32.xlu2 %v524_v31, %s1748_s4  ;;  %461 = vrot.lane.b32.xlu1 %v451_v32, %s1748_s4 }
 0x1d6   :  { %v403_v33 = vpop.permute.xlu1 %402 }
 0x1d7   :  { %v404_v35 = vsel %vm2617_vm12, %v403_v33, %v1951_v3 }
 0x1d8   :  { %411 = vrot.lane.b32.xlu0 %v404_v35, %s1748_s4 }
 0x1d9   :  { %v459_v36 = vpop.permute.xlu0 %458 }
 0x1da   :  { %v460_v39 = vsel %vm2617_vm12, %v459_v36, %v1957_v4 }
 0x1db   :  { %467 = vrot.lane.b32.xlu1 %v460_v39, %s1748_s4  ;;  %409 = vrot.lane.b32.xlu2 %v401_v40, %s1748_s4 }
 0x20a   :  { %v526_v41 = vpop.permute.xlu2 %525 }
 0x20b   :  { %v533_v42 = vsel %vm2617_vm12, %v526_v41, %v1846_v12 }
 0x20c   :  { %541 = vrot.lane.b32.xlu1 %v533_v42, %s1749_s16  ;;  %557 = vrot.lane.b32.xlu2 %v533_v42, %s1750_s17 }
 0x212   :  { %v528_v45 = vpop.permute.xlu0 %527 }
 0x213   :  { %v534_v47 = vsel %vm2617_vm12, %v528_v45, %v1863_v26 }
 0x214   :  { %543 = vrot.lane.b32.xlu2 %v534_v47, %s1749_s16 }
 0x215   :  { %v406_v48 = vpop.permute.xlu2 %405 }
 0x216   :  { %v413_v50 = vsel %vm2617_vm12, %v406_v48, %v1887_v38 }
 0x217   :  { %421 = vrot.lane.b32.xlu1 %v413_v50, %s1749_s16 }
 0x21d   :  { %v464_v51 = vpop.permute.xlu2 %463  ;;  %v466_v58 = vpop.permute.xlu0 %465 }
 0x21e   :  { %v470_v53 = vsel %vm2617_vm12, %v464_v51, %v1883_v37  ;;  %v471_v60 = vsel %vm2617_vm12, %v466_v58, %v1908_v52 }
 0x21f   :  { %433 = vrot.lane.b32.xlu1 %v413_v50, %s1750_s17  ;;  %479 = vrot.lane.b32.xlu0 %v470_v53, %s1750_s17 }
 0x225   :  { %v408_v54 = vpop.permute.xlu2 %407 }
 0x226   :  { %v414_v55 = vsel %vm2617_vm12, %v408_v54, %v1931_v62 }
 0x227   :  { %491 = vrot.lane.b32.xlu1 %v470_v53, %s1749_s16  ;;  %423 = vrot.lane.b32.xlu2 %v414_v55, %s1749_s16 }
 0x22d   :  { %v532_v63 = vpop.permute.xlu2 %531 }
 0x22e   :  { %v536_v5 = vsel %vm2617_vm12, %v532_v63, %v1916_v57  ;;  %v105_v63 = vand.u32 127, %v99_v16  ;;  %v2643_v16 = vmov 0 }
 0x22f   :  { %481 = vrot.lane.b32.xlu1 %v471_v60, %s1750_s17  ;;  %435 = vrot.lane.b32.xlu2 %v414_v55, %s1750_s17 }
 0x230   :  { %vm2623_vm0 = vcmp.le.s32.totalorder %v105_v63, 30 }
 0x235   :  { %v530_v0 = vpop.permute.xlu1 %529  ;;  %v410_v7 = vpop.permute.xlu2 %409 }
 0x236   :  { %v535_v6 = vsel %vm2617_vm12, %v530_v0, %v1895_v44  ;;  %v415_v8 = vsel %vm2617_vm12, %v410_v7, %v1939_v1 }
 0x237   :  { %547 = vrot.lane.b32.xlu1 %v536_v5, %s1749_s16  ;;  %493 = vrot.lane.b32.xlu2 %v471_v60, %s1749_s16 }
 0x238   :  { %545 = vrot.lane.b32.xlu0 %v535_v6, %s1749_s16 }
 0x240   :  { %425 = vrot.lane.b32.xlu0 %v415_v8, %s1749_s16 }
 0x245   :  { %v462_v9 = vpop.permute.xlu1 %461 }
 0x246   :  { %v469_v10 = vsel %vm2617_vm12, %v462_v9, %v1945_v2  ;;  %v103_v9 = vadd.s32 24, %v1859_v22 }
 0x247   :  { %477 = vrot.lane.b32.xlu2 %v469_v10, %s1750_s17 }
 0x24a   :  { %v412_v13 = vpop.permute.xlu0 %411 }
 0x24b   :  { %v416_v15 = vsel %vm2617_vm12, %v412_v13, %v1951_v3 }
 0x24c   :  { %439 = vrot.lane.b32.xlu1 %v416_v15, %s1750_s17  ;;  %427 = vrot.lane.b32.xlu0 %v416_v15, %s1749_s16 }
 0x24d   :  { %v468_v18 = vpop.permute.xlu1 %467 }
 0x24e   :  { %v472_v19 = vsel %vm2617_vm12, %v468_v18, %v1957_v4 }
 0x24f   :  { %483 = vrot.lane.b32.xlu2 %v472_v19, %s1750_s17 }
 0x254   :  { %561 = vrot.lane.b32.xlu1 %v535_v6, %s1750_s17  ;;  %437 = vrot.lane.b32.xlu0 %v415_v8, %s1750_s17 }
 0x257   :  { %563 = vrot.lane.b32.xlu2 %v536_v5, %s1750_s17 }
 0x25c   :  { %489 = vrot.lane.b32.xlu0 %v469_v10, %s1749_s16  ;;  %v1751_v10 = vmov 0.0  }
 0x264   :  { %495 = vrot.lane.b32.xlu0 %v472_v19, %s1749_s16 }
 0x266   :  { %v2045_v20 = vpop.permute.xlu2 %557 }
 0x26c   :  { %559 = vrot.lane.b32.xlu0 %v534_v47, %s1750_s17 }
 0x26e   :  { %v544_v21 = vpop.permute.xlu2 %543 }
 0x27e   :  { %v542_v23 = vpop.permute.xlu1 %541 }
 0x281   :  { %v424_v24 = vpop.permute.xlu2 %423 }
 0x289   :  { %v436_v27 = vpop.permute.xlu2 %435  ;;  %v422_v29 = vpop.permute.xlu1 %421 }
 0x28a   :  { %v446_v30 = vsel %vm371_vm13, %v424_v24, %v436_v27 }
 0x28b   :  { %v506_v31 = vsel %vm1865_vm4, %v1931_v62, %v446_v30 }
 0x28c   :  { %v2053_v32 = vsel %vm1877_vm7, %v544_v21, %v506_v31 }
 0x291   :  { %v434_v33 = vpop.permute.xlu1 %433  ;;  %v480_v39 = vpop.permute.xlu0 %479 }
 0x292   :  { %v445_v35 = vsel %vm2621_vm14, %v422_v29, %v434_v33  ;;  %v494_v42 = vpop.permute.xlu2 %493  ;;  %vm593_vm14 = vcmp.ge.s32.totalorder %v1859_v22, 1 }
 0x293   :  { %v505_v25 = vsel %vm1848_vm2, %v1887_v38, %v445_v35 }
 0x294   :  { %v553_v36 = vsel %vm1852_vm3, %v542_v23, %v505_v25 }
 0x299   :  { %v492_v40 = vpop.permute.xlu1 %491 }
 0x29a   :  { %v2063_v62 = vsel %vm371_vm13, %v480_v39, %v492_v40  ;;  %vm605_vm13 = vcmp.ge.s32.totalorder %v105_v63, 1 }
 0x29b   :  { %v510_v41 = vsel %vm1865_vm4, %v1883_v37, %v2063_v62  ;;  %vm2096_vm6 = vmand %vm605_vm13, %vm2623_vm0 }
 0x29c   :  { %v2644_v16 = vsel %vm2096_vm6, 4294967295, %v2643_v16 }
 0x2a1   :  { %v482_v45 = vpop.permute.xlu1 %481 }
 0x2a2   :  { %v503_v47 = vsel %vm372_vm15, %v482_v45, %v494_v42 }
 0x2a3   :  { %v511_v38 = vsel %vm1897_vm8, %v1908_v52, %v503_v47  ;;  %v478_v52 = vpop.permute.xlu2 %477 }
 0x2a9   :  { %v548_v50 = vpop.permute.xlu1 %547 }
 0x2aa   :  { %v546_v48 = vpop.permute.xlu0 %545 }
 0x2ab   :  { %v484_v43 = vpop.permute.xlu2 %483 }
 0x2b2   :  { %v426_v51 = vpop.permute.xlu0 %425 }
 0x2be   :  { %v428_v53 = vpop.permute.xlu0 %427  ;;  %v440_v54 = vpop.permute.xlu1 %439 }
 0x2bf   :  { %v448_v55 = vsel %vm2620_vm1, %v428_v53, %v440_v54 }
 0x2c0   :  { %v508_v58 = vsel %vm1918_vm10, %v1951_v3, %v448_v55 }
 0x2c1   :  { %v556_v60 = vsel %vm1923_vm11, %v548_v50, %v508_v58  ;;  %vm2645_vm11 = vcmp.ge.f32.partialorder %v1844_v11, 0.0 }
 0x2c6   :  { %v438_v0 = vpop.permute.xlu0 %437  ;;  %v562_v5 = vpop.permute.xlu1 %561 }
 0x2c7   :  { %v447_v6 = vsel %vm372_vm15, %v426_v51, %v438_v0  ;;  %v571_v7 = vsel %vm1902_vm9, %v562_v5, %v511_v38 }
 0x2c8   :  { %v507_v3 = vsel %vm1897_vm8, %v1939_v1, %v447_v6  ;;  %vm579_vm15 = vcmp.ge.f32.partialorder %v1895_v44, %v571_v7 }
 0x2c9   :  { %v555_v8 = vsel %vm1902_vm9, %v546_v48, %v507_v3  ;;  %vm606_vm9 = vmand %vm593_vm14, %vm605_vm13  ;;  %vm585_vm14 = vcmp.gt.f32.partialorder %v1846_v12, 0.0 }
 0x2ca   :  { %vm575_vm12 = vcmp.ge.f32.partialorder %v1895_v44, %v555_v8 }
 0x2cb   :  { %vm583_vm1 = vmand %vm575_vm12, %vm579_vm15 }
 0x2cc   :  { %vm591_vm7 = vmand %vm583_vm1, %vm587_vm5  ;;  %vm573_vm5 = vcmp.ge.f32.partialorder %v1846_v12, %v553_v36 }
 0x2cd   :  { %vm617_vm8 = vmand %vm591_vm7, %vm2096_vm6  ;;  %vm2646_vm7 = vcmp.le.s32.totalorder %v105_v63, 30 }
 0x2ce   :  { %v621_v46 = vsel %vm617_vm8, %v1895_v44, 0.0  ;;  %v490_v49 = vpop.permute.xlu0 %489  ;;  %vm611_vm12 = vmand %vm606_vm9, %vm2646_vm7  ;;  %vm2648_vm9 = vnez %v2642_v61 }
 0x2cf   :  { %vm625_vm0 = vcmp.gt.f32.partialorder %v621_v46, 0.01  ;;  %vm637_vm4 = vcmp.gt.f32.partialorder %v621_v46, 0.04  ;;  %v501_v1 = vsel %vm2645_vm11, %v478_v52, %v490_v49 }
 0x2d0   :  { %v2110_v13 = vsel %vm625_vm0, 1.0, %v1751_v10  ;;  %v1486_v15 = vsel %vm637_vm4, 1.0, %v1751_v10   ;;  %v509_v18 = vsel %vm1848_vm2, %v1945_v2, %v501_v1  ;;  %vm600_vm0 = vcmp.le.s32.totalorder %v103_v9, 30  ;;  %v564_v2 = vpop.permute.xlu2 %563 }
 0x2d1   :  { %v569_v44 = vsel %vm1852_vm3, %v2045_v20, %v509_v18  ;;  %vm609_vm2 = vmand %vm600_vm0, %vm605_vm13  ;;  %vm2647_vm3 = vcmp.ge.f32.partialorder %v1914_v56, 0.0 }
 0x2d2   :  { %vm577_vm11 = vcmp.ge.f32.partialorder %v1846_v12, %v569_v44  ;;  %vm614_vm13 = vmand %vm609_vm2, %vm2646_vm7  ;;  %vm574_vm2 = vcmp.ge.f32.partialorder %v1863_v26, %v2053_v32  ;;  %vm2651_vm7 = vnez %v2644_v16 }
 0x2d3   :  { %vm581_vm1 = vmand %vm573_vm5, %vm577_vm11  ;;  %vm576_vm5 = vcmp.ge.f32.partialorder %v1916_v57, %v556_v60  ;;  %vm588_vm11 = vcmp.gt.f32.partialorder %v1916_v57, 0.0 }
 0x2d4   :  { %vm589_vm15 = vmand %vm581_vm1, %vm585_vm14 }
 0x2d5   :  { %vm615_vm4 = vmand %vm589_vm15, %vm611_vm12 }
 0x2d6   :  { %v619_v11 = vsel %vm615_vm4, %v1846_v12, 0.0  ;;  %v496_v14 = vpop.permute.xlu0 %495  ;;  %vm2650_vm4 = vnez %v2634_v34 }
 0x2d7   :  { %vm623_vm8 = vcmp.gt.f32.partialorder %v619_v11, 0.01  ;;  %vm635_vm6 = vcmp.gt.f32.partialorder %v619_v11, 0.04  ;;  %v504_v17 = vsel %vm2647_vm3, %v484_v43, %v496_v14  ;;  %vm586_vm3 = vcmp.gt.f32.partialorder %v1863_v26, 0.0 }
 0x2d8   :  { %v2126_v19 = vsel %vm623_vm8, 1.0, %v1751_v10  ;;  %v1484_v20 = vsel %vm635_vm6, 1.0, %v1751_v10   ;;  %v512_v21 = vsel %vm1918_vm10, %v1957_v4, %v504_v17 }
 0x2d9   :  { %v572_v23 = vsel %vm2648_vm9, %v564_v2, %v512_v21 }
 0x2da   :  { %vm580_vm12 = vcmp.ge.f32.partialorder %v1916_v57, %v572_v23 }
 0x2db   :  { %vm584_vm14 = vmand %vm576_vm5, %vm580_vm12 }
 0x2dc   :  { %vm592_vm1 = vmand %vm584_vm14, %vm588_vm11 }
 0x2dd   :  { %vm618_vm0 = vmand %vm592_vm1, %vm614_vm13 }
 0x2de   :  { %v622_v12 = vsel %vm618_vm0, %v1916_v57, 0.0  ;;  %v560_v56 = vpop.permute.xlu0 %559 }
 0x2df   :  { %vm626_vm6 = vcmp.gt.f32.partialorder %v622_v12, 0.01  ;;  %vm638_vm15 = vcmp.gt.f32.partialorder %v622_v12, 0.04  ;;  %v570_v59 = vsel %vm2650_vm4, %v560_v56, %v510_v41 }
 0x2e0   :  { %v2145_v61 = vsel %vm626_vm6, 1.0, %v1751_v10  ;;  %v1487_v4 = vsel %vm638_vm15, 1.0, %v1751_v10   ;;  %vm578_vm8 = vcmp.ge.f32.partialorder %v1863_v26, %v570_v59 }
 0x2e1   :  { %vm582_vm9 = vmand %vm574_vm2, %vm578_vm8 }
 0x2e2   :  { %vm590_vm5 = vmand %vm582_vm9, %vm586_vm3 }
 0x2e3   :  { %vm616_vm13 = vmand %vm590_vm5, %vm2651_vm7 }
 0x2e4   :  { %v620_v28 = vsel %vm616_vm13, %v1863_v26, 0.0 }
 0x2e5   :  { %vm624_vm12 = vcmp.gt.f32.partialorder %v620_v28, 0.01  ;;  %vm636_vm11 = vcmp.gt.f32.partialorder %v620_v28, 0.04 }
 0x2e6   :  { %v2154_v34 = vsel %vm624_vm12, 1.0, %v1751_v10  ;;  %v1485_v37 = vsel %vm636_vm11, 1.0, %v1751_v10  }
 0x2e7 LB: > { %v661_v26 = vrot.slane %v1730_v37, 7  ;;  %v662_v57 = vrot.slane %v1726_v15, 7  ;;  %v670_v24 = vrot.slane %v1726_v15, 1  ;;  %v671_v27 = vrot.slane %v1722_v4, 1  ;;  %s1752_s19 = smov 32   ;;  %s1753_s20 = smov 30   ;;  %s1738_s18 = sphi %s2164_s18, %s1418_s18   ;;  %v1734_v20 = vphi %v1484_v20, %v2773_v20   ;;  %v1730_v37 = vphi %v1485_v37, %v2772_v37   ;;  %v1726_v15 = vphi %v1486_v15, %v2771_v15   ;;  %v1722_v4 = vphi %v1487_v4, %v2770_v4  }
 0x2e8   : > { %v660_v29 = vrot.slane %v1734_v20, 7  ;;  %v663_v30 = vrot.slane %v1722_v4, 7  ;;  %v668_v31 = vrot.slane %v1734_v20, 1  ;;  %v669_v32 = vrot.slane %v1730_v37, 1  ;;  %s1754_s21 = smov 97   ;;  %s1418_s18 = sadd.s32 1, %s1738_s18  }
 0x2e9   : > { %vm2652_vm14 = vcmp.lt.s32.totalorder %v1859_v22, 1  ;;  %vm2653_vm1 = vcmp.lt.s32.totalorder %v1859_v22, 7  ;;  %vm2660_vm8 = vcmask 1047808   ;;  %p654_p1 = scmp.lt.s32.totalorder %s1418_s18, 8 }
 0x2ea   : > { %v665_v33 = vsel %vm2652_vm14, %v661_v26, %v662_v57  ;;  %v672_v35 = vsel %vm2653_vm1, %v670_v24, %v671_v27  ;;  %vm2654_vm0 = vmmov %vm2652_vm14 }
 0x2eb   : > { %v678_v25 = vmax.f32 %v665_v33, %v672_v35  ;;  %v667_v36 = vsel %vm2654_vm0, %v663_v30, %v660_v29  ;;  %vm2655_vm6 = vmmov %vm2653_vm1 }
 0x2ec   : > { %v674_v39 = vsel %vm2655_vm6, %v668_v31, %v669_v32  ;;  %vm2656_vm15 = vmmov %vm2654_vm0 }
 0x2ed   : > { %v676_v40 = vmax.f32 %v667_v36, %v674_v39  ;;  %v664_v62 = vsel %vm2656_vm15, %v662_v57, %v663_v30  ;;  %vm2657_vm10 = vmmov %vm2653_vm1  ;;  %v682_v42 = vmax.f32 %v1726_v15, %v678_v25 }
 0x2ee   : > { %v675_v41 = vsel %vm2657_vm10, %v671_v27, %v668_v31  ;;  %vm2658_vm4 = vmmov %vm2654_vm0 }
 0x2ef   : > { %v666_v45 = vsel %vm2658_vm4, %v660_v29, %v661_v26  ;;  %vm2659_vm2 = vmmov %vm2653_vm1  ;;  %v680_v38 = vmax.f32 %v1734_v20, %v676_v40  ;;  %690 = vrot.lane.b32.xlu1 %v682_v42, %s1752_s19  ;;  %v679_v48 = vmax.f32 %v664_v62, %v675_v41 }
 0x2f0   : > { %v673_v47 = vsel %vm2659_vm2, %v669_v32, %v670_v24  ;;  %vm2661_vm3 = vmmov %vm2660_vm8 }
 0x2f1   : > { %684 = vrot.lane.b32.xlu0 %v680_v38, %s1752_s19  ;;  %v677_v50 = vmax.f32 %v666_v45, %v673_v47  ;;  %v683_v51 = vmax.f32 %v1722_v4, %v679_v48  ;;  %vm2662_vm9 = vmmov %vm2661_vm3 }
 0x2f2   : > { %vm2663_vm5 = vmmov %vm2661_vm3 }
 0x2f3   : > { %v681_v53 = vmax.f32 %v1730_v37, %v677_v50  ;;  %vm2664_vm7 = vmmov %vm2661_vm3 }
 0x2f4   : > { %vm2665_vm13 = vmmov %vm2661_vm3 }
 0x2f5   : > { %vm2666_vm12 = vmmov %vm2661_vm3 }
 0x2f6   : > { %vm2667_vm11 = vmmov %vm2661_vm3 }
 0x2f7   : > { %693 = vrot.lane.b32.xlu1 %v683_v51, %s1752_s19  ;;  %vm2668_vm14 = vmmov %vm2654_vm0 }
 0x2f8   : > { %vm2669_vm6 = vmmov %vm2654_vm0 }
 0x2f9   : > { %687 = vrot.lane.b32.xlu0 %v681_v53, %s1752_s19  ;;  %vm2670_vm15 = vmmov %vm2653_vm1 }
 0x2fa   : > { %vm2671_vm10 = vmmov %vm2653_vm1 }
 0x2fb   : > { %vm2672_vm4 = vmmov %vm2654_vm0 }
 0x2fc   : > { %vm2673_vm2 = vmmov %vm2653_vm1 }
 0x361   : > { %v691_v54 = vpop.permute.xlu1 %690 }
 0x362   : > { %v692_v55 = vsel %vm2660_vm8, %v691_v54, %v682_v42  ;;  %vm2674_vm8 = vmmov %vm2661_vm3 }
 0x363   : > { %v685_v58 = vpop.permute.xlu0 %684  ;;  %700 = vrot.lane.b32.xlu0 %v692_v55, %s1752_s19 }
 0x364   : > { %v686_v60 = vsel %vm2661_vm3, %v685_v58, %v680_v38 }
 0x365   : > { %696 = vrot.lane.b32.xlu2 %v686_v60, %s1752_s19 }
 0x369   : > { %v694_v63 = vpop.permute.xlu1 %693 }
 0x36a   : > { %v695_v0 = vsel %vm2662_vm9, %v694_v63, %v683_v51  ;;  %vm2675_vm9 = vmmov %vm2661_vm3 }
 0x36b   : > { %v688_v52 = vpop.permute.xlu0 %687  ;;  %702 = vrot.lane.b32.xlu1 %v695_v0, %s1752_s19 }
 0x36c   : > { %v689_v5 = vsel %vm2663_vm5, %v688_v52, %v681_v53  ;;  %vm2676_vm5 = vmmov %vm2661_vm3 }
 0x36d   : > { %698 = vrot.lane.b32.xlu2 %v689_v5, %s1752_s19 }
 0x3bf   : > { %v697_v6 = vpop.permute.xlu2 %696 }
 0x3c0   : > { %v704_v7 = vsel %vm2664_vm7, %v697_v6, %v680_v38  ;;  %vm2677_vm7 = vmmov %vm2661_vm3 }
 0x3c1   : > { %712 = vrot.lane.b32.xlu2 %v704_v7, %s1753_s20 }
 0x3c7   : > { %v699_v3 = vpop.permute.xlu2 %698 }
 0x3c8   : > { %v705_v8 = vsel %vm2665_vm13, %v699_v3, %v681_v53  ;;  %vm2678_vm13 = vmmov %vm2661_vm3 }
 0x3c9   : > { %714 = vrot.lane.b32.xlu0 %v705_v8, %s1753_s20 }
 0x3d5   : > { %v701_v16 = vpop.permute.xlu0 %700 }
 0x3d6   : > { %v706_v43 = vsel %vm2666_vm12, %v701_v16, %v682_v42  ;;  %vm2679_vm12 = vmmov %vm2661_vm3 }
 0x3d7   : > { %716 = vrot.lane.b32.xlu1 %v706_v43, %s1753_s20 }
 0x3dd   : > { %v703_v46 = vpop.permute.xlu1 %702 }
 0x3de   : > { %v707_v49 = vsel %vm2667_vm11, %v703_v46, %v683_v51  ;;  %vm2680_vm11 = vmmov %vm2661_vm3 }
 0x3df   : > { %718 = vrot.lane.b32.xlu2 %v707_v49, %s1753_s20 }
 0x41b   : > { %v713_v1 = vpop.permute.xlu2 %712 }
 0x41c   : > { %v724_v9 = vmax.f32 %v704_v7, %v713_v1 }
 0x41e   : > { %732 = vrot.lane.b32.xlu0 %v724_v9, %s1754_s21 }
 0x439   : > { %v719_v10 = vpop.permute.xlu2 %718 }
 0x43a   : > { %v727_v44 = vmax.f32 %v707_v49, %v719_v10 }
 0x43b   : > { %v715_v18 = vpop.permute.xlu0 %714 }
 0x43c   : > { %v725_v11 = vmax.f32 %v705_v8, %v715_v18  ;;  %738 = vrot.lane.b32.xlu0 %v727_v44, %s1754_s21 }
 0x43e   : > { %734 = vrot.lane.b32.xlu1 %v725_v11, %s1754_s21 }
 0x449   : > { %v717_v14 = vpop.permute.xlu1 %716 }
 0x44a   : > { %v726_v17 = vmax.f32 %v706_v43, %v717_v14 }
 0x44c   : > { %736 = vrot.lane.b32.xlu2 %v726_v17, %s1754_s21 }
 0x490   : > { %v733_v2 = vpop.permute.xlu0 %732 }
 0x491   : > { %v744_v23 = vmax.f32 %v680_v38, %v733_v2 }
 0x493   : > { %v748_v59 = vmul.f32 %v2126_v19, %v744_v23 }
 0x495   : > { %v752_v30 = vrot.slane %v748_v59, 7  ;;  %v760_v39 = vrot.slane %v748_v59, 1 }
 0x4a6   : > { %v737_v21 = vpop.permute.xlu2 %736 }
 0x4a7   : > { %v746_v12 = vmax.f32 %v682_v42, %v737_v21 }
 0x4a9   : > { %v750_v28 = vmul.f32 %v2110_v13, %v746_v12 }
 0x4ab   : > { %v762_v31 = vrot.slane %v750_v28, 1  ;;  %v754_v35 = vrot.slane %v750_v28, 7 }
 0x4ae   : > { %v739_v56 = vpop.permute.xlu0 %738 }
 0x4af   : > { %v747_v26 = vmax.f32 %v683_v51, %v739_v56 }
 0x4b0   : > { %v735_v57 = vpop.permute.xlu1 %734 }
 0x4b1   : > { %v745_v24 = vmax.f32 %v681_v53, %v735_v57  ;;  %v751_v27 = vmul.f32 %v2145_v61, %v747_v26 }
 0x4b3   : > { %v749_v29 = vmul.f32 %v2154_v34, %v745_v24  ;;  %v755_v32 = vrot.slane %v751_v27, 7  ;;  %v763_v33 = vrot.slane %v751_v27, 1 }
 0x4b5   : > { %v753_v25 = vrot.slane %v749_v29, 7  ;;  %v761_v36 = vrot.slane %v749_v29, 1  ;;  %v759_v40 = vsel %vm2668_vm14, %v755_v32, %v752_v30  ;;  %v764_v62 = vsel %vm2653_vm1, %v762_v31, %v763_v33  ;;  %vm2681_vm14 = vmmov %vm2653_vm1 }
 0x4b6   : > { %v756_v55 = vsel %vm2672_vm4, %v754_v35, %v755_v32  ;;  %v767_v58 = vsel %vm2673_vm2, %v763_v33, %v760_v39  ;;  %vm2682_vm1 = vmmov %vm2654_vm0 }
 0x4b7   : > { %v757_v41 = vsel %vm2654_vm0, %v753_v25, %v754_v35  ;;  %v758_v42 = vsel %vm2669_vm6, %v752_v30, %v753_v25  ;;  %v765_v45 = vsel %vm2670_vm15, %v761_v36, %v762_v31  ;;  %v766_v47 = vsel %vm2671_vm10, %v760_v39, %v761_v36  ;;  %vm2683_vm0 = vmmov %vm2673_vm2 }
 0x4b8   : > { %v769_v38 = vmax.f32 %v758_v42, %v765_v45  ;;  %v770_v48 = vmax.f32 %v757_v41, %v764_v62  ;;  %v768_v50 = vmax.f32 %v759_v40, %v766_v47  ;;  %v771_v60 = vmax.f32 %v756_v55, %v767_v58  ;;  %vm2684_vm6 = vmmov %vm2682_vm1 }
 0x4b9   : > { %vm2685_vm15 = vmmov %vm2682_vm1 }
 0x4ba   : > { %v773_v51 = vmax.f32 %v749_v29, %v769_v38  ;;  %v774_v53 = vmax.f32 %v750_v28, %v770_v48  ;;  %v772_v54 = vmax.f32 %v748_v59, %v768_v50  ;;  %v775_v63 = vmax.f32 %v751_v27, %v771_v60  ;;  %vm2686_vm10 = vmmov %vm2683_vm0 }
 0x4bb   : > { %vm2687_vm4 = vmmov %vm2682_vm1 }
 0x4bc   : > { %779 = vrot.lane.b32.xlu2 %v773_v51, %s1752_s19  ;;  %782 = vrot.lane.b32.xlu0 %v774_v53, %s1752_s19  ;;  %vm2688_vm2 = vmmov %vm2683_vm0 }
 0x4bd   : > { %776 = vrot.lane.b32.xlu1 %v772_v54, %s1752_s19 }
 0x4c5   : > { %785 = vrot.lane.b32.xlu1 %v775_v63, %s1752_s19 }
 0x516   : > { %v780_v52 = vpop.permute.xlu2 %779 }
 0x517   : > { %v781_v0 = vsel %vm2674_vm8, %v780_v52, %v773_v51  ;;  %vm2689_vm8 = vmmov %vm2661_vm3 }
 0x518   : > { %790 = vrot.lane.b32.xlu0 %v781_v0, %s1752_s19 }
 0x52e   : > { %v783_v5 = vpop.permute.xlu0 %782 }
 0x52f   : > { %v777_v6 = vpop.permute.xlu1 %776  ;;  %v784_v7 = vsel %vm2661_vm3, %v783_v5, %v774_v53 }
 0x530   : > { %v778_v3 = vsel %vm2675_vm9, %v777_v6, %v772_v54  ;;  %792 = vrot.lane.b32.xlu1 %v784_v7, %s1752_s19  ;;  %vm2690_vm9 = vmmov %vm2661_vm3 }
 0x531   : > { %788 = vrot.lane.b32.xlu2 %v778_v3, %s1752_s19 }
 0x537   : > { %v786_v8 = vpop.permute.xlu1 %785 }
 0x538   : > { %v787_v16 = vsel %vm2676_vm5, %v786_v8, %v775_v63  ;;  %vm2691_vm5 = vmmov %vm2661_vm3 }
 0x539   : > { %794 = vrot.lane.b32.xlu2 %v787_v16, %s1752_s19 }
 0x58a   : > { %v791_v43 = vpop.permute.xlu0 %790 }
 0x58b   : > { %v789_v46 = vpop.permute.xlu2 %788  ;;  %v797_v49 = vsel %vm2677_vm7, %v791_v43, %v773_v51  ;;  %vm2692_vm7 = vmmov %vm2661_vm3 }
 0x58c   : > { %v796_v1 = vsel %vm2678_vm13, %v789_v46, %v772_v54  ;;  %806 = vrot.lane.b32.xlu1 %v797_v49, %s1753_s20  ;;  %vm2693_vm13 = vmmov %vm2661_vm3 }
 0x58d   : > { %804 = vrot.lane.b32.xlu0 %v796_v1, %s1753_s20 }
 0x593   : > { %v795_v9 = vpop.permute.xlu2 %794 }
 0x594   : > { %v799_v10 = vsel %vm2679_vm12, %v795_v9, %v775_v63  ;;  %vm2694_vm12 = vmmov %vm2661_vm3 }
 0x595   : > { %810 = vrot.lane.b32.xlu0 %v799_v10, %s1753_s20 }
 0x5a2   : > { %v793_v18 = vpop.permute.xlu1 %792 }
 0x5a3   : > { %v798_v44 = vsel %vm2680_vm11, %v793_v18, %v774_v53  ;;  %vm2695_vm11 = vmmov %vm2661_vm3 }
 0x5a4   : > { %808 = vrot.lane.b32.xlu2 %v798_v44, %s1753_s20 }
 0x5fe   : > { %v809_v11 = vpop.permute.xlu2 %808  ;;  %v807_v14 = vpop.permute.xlu1 %806 }
 0x5ff   : > { %v818_v17 = vmax.f32 %v798_v44, %v809_v11  ;;  %v817_v2 = vmax.f32 %v797_v49, %v807_v14  ;;  %v805_v21 = vpop.permute.xlu0 %804 }
 0x600   : > { %v816_v23 = vmax.f32 %v796_v1, %v805_v21 }
 0x601   : > { %828 = vrot.lane.b32.xlu0 %v818_v17, %s1754_s21  ;;  %826 = vrot.lane.b32.xlu2 %v817_v2, %s1754_s21 }
 0x602   : > { %824 = vrot.lane.b32.xlu1 %v816_v23, %s1754_s21 }
 0x607   : > { %v811_v12 = vpop.permute.xlu0 %810 }
 0x608   : > { %v819_v56 = vmax.f32 %v799_v10, %v811_v12 }
 0x60a   : > { %830 = vrot.lane.b32.xlu1 %v819_v56, %s1754_s21 }
 0x65b   : > { %v827_v59 = vpop.permute.xlu2 %826 }
 0x65c   : > { %v837_v28 = vmax.f32 %v773_v51, %v827_v59 }
 0x65e   : > { %v841_v57 = vmul.f32 %v2154_v34, %v837_v28 }
 0x660   : > { %v853_v32 = vrot.slane %v841_v57, 1  ;;  %v845_v35 = vrot.slane %v841_v57, 7 }
 0x673   : > { %v829_v26 = vpop.permute.xlu0 %828 }
 0x674   : > { %v825_v24 = vpop.permute.xlu1 %824  ;;  %v838_v27 = vmax.f32 %v774_v53, %v829_v26 }
 0x675   : > { %v836_v29 = vmax.f32 %v772_v54, %v825_v24 }
 0x676   : > { %v842_v30 = vmul.f32 %v2110_v13, %v838_v27 }
 0x677   : > { %v840_v31 = vmul.f32 %v2126_v19, %v836_v29 }
 0x678   : > { %v854_v33 = vrot.slane %v842_v30, 1  ;;  %v846_v47 = vrot.slane %v842_v30, 7 }
 0x679   : > { %v844_v25 = vrot.slane %v840_v31, 7  ;;  %v852_v45 = vrot.slane %v840_v31, 1 }
 0x67a   : > { %v857_v36 = vsel %vm2681_vm14, %v853_v32, %v854_v33  ;;  %v849_v53 = vsel %vm2684_vm6, %v845_v35, %v846_v47  ;;  %vm2696_vm14 = vmmov %vm2682_vm1 }
 0x67b   : > { %v850_v39 = vsel %vm2682_vm1, %v844_v25, %v845_v35  ;;  %v858_v51 = vsel %vm2683_vm0, %v852_v45, %v853_v32  ;;  %vm2697_vm1 = vmmov %vm2683_vm0 }
 0x67c   : > { %v861_v40 = vmax.f32 %v850_v39, %v857_v36  ;;  %v831_v62 = vpop.permute.xlu1 %830  ;;  %vm2698_vm6 = vmmov %vm2687_vm4 }
 0x67d   : > { %v839_v41 = vmax.f32 %v775_v63, %v831_v62 }
 0x67e   : > { %v2284_v42 = vmax.f32 %v841_v57, %v861_v40 }
 0x67f   : > { %v843_v38 = vmul.f32 %v2145_v61, %v839_v41 }
 0x680   : > { %871 = vrot.lane.b32.xlu0 %v2284_v42, %s1752_s19 }
 0x681   : > { %v847_v48 = vrot.slane %v843_v38, 7  ;;  %v855_v50 = vrot.slane %v843_v38, 1 }
 0x683   : > { %v851_v54 = vsel %vm2685_vm15, %v847_v48, %v844_v25  ;;  %v856_v55 = vsel %vm2686_vm10, %v854_v33, %v855_v50  ;;  %v848_v0 = vsel %vm2687_vm4, %v846_v47, %v847_v48  ;;  %v859_v5 = vsel %vm2688_vm2, %v855_v50, %v852_v45  ;;  %vm2699_vm15 = vmmov %vm2687_vm4 }
 0x684   : > { %v860_v58 = vmax.f32 %v851_v54, %v858_v51  ;;  %v862_v60 = vmax.f32 %v849_v53, %v856_v55  ;;  %v863_v6 = vmax.f32 %v848_v0, %v859_v5  ;;  %vm2700_vm10 = vmmov %vm2687_vm4 }
 0x685   : > { %vm2701_vm4 = vmmov %vm2683_vm0 }
 0x686   : > { %v864_v63 = vmax.f32 %v840_v31, %v860_v58  ;;  %v2297_v52 = vmax.f32 %v842_v30, %v862_v60  ;;  %v867_v7 = vmax.f32 %v843_v38, %v863_v6  ;;  %vm2702_vm2 = vmmov %vm2683_vm0 }
 0x688   : > { %868 = vrot.lane.b32.xlu2 %v864_v63, %s1752_s19  ;;  %874 = vrot.lane.b32.xlu1 %v2297_v52, %s1752_s19 }
 0x690   : > { %877 = vrot.lane.b32.xlu2 %v867_v7, %s1752_s19 }
 0x6e2   : > { %v869_v3 = vpop.permute.xlu2 %868 }
 0x6e3   : > { %v870_v8 = vsel %vm2689_vm8, %v869_v3, %v864_v63  ;;  %vm2703_vm8 = vmmov %vm2661_vm3 }
 0x6e4   : > { %880 = vrot.lane.b32.xlu0 %v870_v8, %s1752_s19 }
 0x6ea   : > { %v878_v16 = vpop.permute.xlu2 %877 }
 0x6eb   : > { %v879_v43 = vsel %vm2661_vm3, %v878_v16, %v867_v7 }
 0x6ec   : > { %886 = vrot.lane.b32.xlu0 %v879_v43, %s1752_s19 }
 0x6f2   : > { %v872_v46 = vpop.permute.xlu0 %871 }
 0x6f3   : > { %v873_v49 = vsel %vm2690_vm9, %v872_v46, %v2284_v42  ;;  %vm2704_vm9 = vmmov %vm2661_vm3 }
 0x6f4   : > { %882 = vrot.lane.b32.xlu1 %v873_v49, %s1752_s19 }
 0x6fa   : > { %v875_v1 = vpop.permute.xlu1 %874 }
 0x6fb   : > { %v876_v9 = vsel %vm2691_vm5, %v875_v1, %v2297_v52  ;;  %vm2705_vm5 = vmmov %vm2661_vm3 }
 0x6fc   : > { %884 = vrot.lane.b32.xlu2 %v876_v9, %s1752_s19 }
 0x756   : > { %v881_v10 = vpop.permute.xlu0 %880  ;;  %v885_v18 = vpop.permute.xlu2 %884 }
 0x757   : > { %v888_v44 = vsel %vm2692_vm7, %v881_v10, %v864_v63  ;;  %v890_v11 = vsel %vm2693_vm13, %v885_v18, %v2297_v52  ;;  %vm2706_vm7 = vmmov %vm2661_vm3 }
 0x758   : > { %896 = vrot.lane.b32.xlu1 %v888_v44, %s1753_s20  ;;  %900 = vrot.lane.b32.xlu0 %v890_v11, %s1753_s20  ;;  %vm2707_vm13 = vmmov %vm2661_vm3 }
 0x75e   : > { %v887_v14 = vpop.permute.xlu0 %886 }
 0x75f   : > { %v891_v17 = vsel %vm2694_vm12, %v887_v14, %v867_v7  ;;  %vm2708_vm12 = vmmov %vm2661_vm3 }
 0x760   : > { %902 = vrot.lane.b32.xlu1 %v891_v17, %s1753_s20 }
 0x766   : > { %v883_v2 = vpop.permute.xlu1 %882 }
 0x767   : > { %v889_v21 = vsel %vm2695_vm11, %v883_v2, %v2284_v42  ;;  %vm2709_vm11 = vmmov %vm2661_vm3 }
 0x768   : > { %898 = vrot.lane.b32.xlu2 %v889_v21, %s1753_s20 }
 0x7c2   : > { %v899_v23 = vpop.permute.xlu2 %898 }
 0x7c3   : > { %v909_v12 = vmax.f32 %v889_v21, %v899_v23 }
 0x7c5   : > { %918 = vrot.lane.b32.xlu0 %v909_v12, %s1754_s21 }
 0x7ca   : > { %v897_v56 = vpop.permute.xlu1 %896  ;;  %v901_v59 = vpop.permute.xlu0 %900 }
 0x7cb   : > { %v908_v28 = vmax.f32 %v888_v44, %v897_v56  ;;  %v910_v26 = vmax.f32 %v890_v11, %v901_v59 }
 0x7cd   : > { %916 = vrot.lane.b32.xlu2 %v908_v28, %s1754_s21  ;;  %920 = vrot.lane.b32.xlu1 %v910_v26, %s1754_s21 }
 0x7d2   : > { %v903_v57 = vpop.permute.xlu1 %902 }
 0x7d3   : > { %v911_v24 = vmax.f32 %v891_v17, %v903_v57 }
 0x7d5   : > { %922 = vrot.lane.b32.xlu2 %v911_v24, %s1754_s21 }
 0x827   : > { %v917_v27 = vpop.permute.xlu2 %916 }
 0x828   : > { %v928_v31 = vmax.f32 %v864_v63, %v917_v27 }
 0x82a   : > { %v932_v35 = vmul.f32 %v2126_v19, %v928_v31 }
 0x82c   : > { %v936_v40 = vrot.slane %v932_v35, 7  ;;  %v944_v62 = vrot.slane %v932_v35, 1 }
 0x82f   : > { %v923_v29 = vpop.permute.xlu2 %922 }
 0x830   : > { %v931_v30 = vmax.f32 %v867_v7, %v923_v29 }
 0x832   : > { %v935_v32 = vmul.f32 %v2145_v61, %v931_v30 }
 0x834   : > { %v939_v36 = vrot.slane %v935_v32, 7  ;;  %v947_v51 = vrot.slane %v935_v32, 1 }
 0x836   : > { %v943_v45 = vsel %vm2696_vm14, %v939_v36, %v936_v40  ;;  %v951_v60 = vsel %vm2683_vm0, %v947_v51, %v944_v62  ;;  %vm2710_vm14 = vmmov %vm2698_vm6 }
 0x837   : > { %v919_v33 = vpop.permute.xlu0 %918 }
 0x838   : > { %v929_v25 = vmax.f32 %v2284_v42, %v919_v33 }
 0x83a   : > { %v933_v39 = vmul.f32 %v2154_v34, %v929_v25 }
 0x83c   : > { %v945_v41 = vrot.slane %v933_v39, 1  ;;  %v937_v53 = vrot.slane %v933_v39, 7 }
 0x83e   : > { %v950_v47 = vsel %vm2697_vm1, %v944_v62, %v945_v41  ;;  %v942_v63 = vsel %vm2698_vm6, %v936_v40, %v937_v53  ;;  %vm2711_vm1 = vmmov %vm2698_vm6 }
 0x83f   : > { %v952_v38 = vmax.f32 %v943_v45, %v950_v47  ;;  %v921_v48 = vpop.permute.xlu1 %920  ;;  %vm2712_vm6 = vmmov %vm2683_vm0 }
 0x840   : > { %v930_v50 = vmax.f32 %v2297_v52, %v921_v48 }
 0x841   : > { %v2340_v54 = vmax.f32 %v932_v35, %v952_v38 }
 0x842   : > { %v934_v42 = vmul.f32 %v2110_v13, %v930_v50 }
 0x843   : > { %960 = vrot.lane.b32.xlu0 %v2340_v54, %s1752_s19 }
 0x844   : > { %v938_v55 = vrot.slane %v934_v42, 7  ;;  %v946_v58 = vrot.slane %v934_v42, 1 }
 0x846   : > { %v940_v52 = vsel %vm2699_vm15, %v938_v55, %v939_v36  ;;  %v941_v0 = vsel %vm2700_vm10, %v937_v53, %v938_v55  ;;  %v948_v5 = vsel %vm2701_vm4, %v946_v58, %v947_v51  ;;  %v949_v6 = vsel %vm2702_vm2, %v945_v41, %v946_v58  ;;  %vm2713_vm15 = vmmov %vm2711_vm1 }
 0x847   : > { %v953_v7 = vmax.f32 %v942_v63, %v949_v6  ;;  %v954_v3 = vmax.f32 %v941_v0, %v948_v5  ;;  %v955_v8 = vmax.f32 %v940_v52, %v951_v60  ;;  %vm2714_vm10 = vmmov %vm2683_vm0 }
 0x848   : > { %vm2715_vm4 = vmmov %vm2711_vm1 }
 0x849   : > { %v958_v16 = vmax.f32 %v934_v42, %v954_v3  ;;  %v957_v43 = vmax.f32 %v933_v39, %v953_v7  ;;  %v959_v46 = vmax.f32 %v935_v32, %v955_v8  ;;  %vm2716_vm2 = vmmov %vm2683_vm0 }
 0x84b   : > { %963 = vrot.lane.b32.xlu1 %v957_v43, %s1752_s19  ;;  %966 = vrot.lane.b32.xlu2 %v958_v16, %s1752_s19 }
 0x84c   : > { %969 = vrot.lane.b32.xlu0 %v959_v46, %s1752_s19 }
 0x8a5   : > { %v967_v49 = vpop.permute.xlu2 %966 }
 0x8a6   : > { %v968_v1 = vsel %vm2703_vm8, %v967_v49, %v958_v16  ;;  %vm2717_vm8 = vmmov %vm2661_vm3 }
 0x8a7   : > { %976 = vrot.lane.b32.xlu0 %v968_v1, %s1752_s19 }
 0x8b5   : > { %v961_v9 = vpop.permute.xlu0 %960 }
 0x8b6   : > { %v962_v10 = vsel %vm2661_vm3, %v961_v9, %v2340_v54 }
 0x8b7   : > { %972 = vrot.lane.b32.xlu1 %v962_v10, %s1752_s19 }
 0x8bd   : > { %v964_v18 = vpop.permute.xlu1 %963 }
 0x8be   : > { %v965_v44 = vsel %vm2704_vm9, %v964_v18, %v957_v43  ;;  %v970_v11 = vpop.permute.xlu0 %969  ;;  %vm2718_vm9 = vmmov %vm2661_vm3 }
 0x8bf   : > { %v971_v14 = vsel %vm2705_vm5, %v970_v11, %v959_v46  ;;  %974 = vrot.lane.b32.xlu2 %v965_v44, %s1752_s19  ;;  %vm2719_vm5 = vmmov %vm2661_vm3 }
 0x8c0   : > { %978 = vrot.lane.b32.xlu1 %v971_v14, %s1752_s19 }
 0x919   : > { %v975_v17 = vpop.permute.xlu2 %974  ;;  %v977_v2 = vpop.permute.xlu0 %976 }
 0x91a   : > { %v981_v21 = vsel %vm2706_vm7, %v975_v17, %v957_v43  ;;  %v982_v23 = vsel %vm2707_vm13, %v977_v2, %v958_v16  ;;  %vm2720_vm7 = vmmov %vm2661_vm3 }
 0x91b   : > { %990 = vrot.lane.b32.xlu0 %v981_v21, %s1753_s20  ;;  %992 = vrot.lane.b32.xlu1 %v982_v23, %s1753_s20  ;;  %vm2721_vm13 = vmmov %vm2661_vm3 }
 0x929   : > { %v973_v12 = vpop.permute.xlu1 %972 }
 0x92a   : > { %v980_v56 = vsel %vm2708_vm12, %v973_v12, %v2340_v54  ;;  %vm2722_vm12 = vmmov %vm2661_vm3 }
 0x92b   : > { %988 = vrot.lane.b32.xlu2 %v980_v56, %s1753_s20 }
 0x932   : > { %v979_v59 = vpop.permute.xlu1 %978 }
 0x933   : > { %v983_v28 = vsel %vm2709_vm11, %v979_v59, %v959_v46  ;;  %vm2723_vm11 = vmmov %vm2661_vm3 }
 0x934   : > { %994 = vrot.lane.b32.xlu2 %v983_v28, %s1753_s20 }
 0x985   : > { %v989_v26 = vpop.permute.xlu2 %988 }
 0x986   : > { %v1000_v57 = vmax.f32 %v980_v56, %v989_v26 }
 0x988   : > { %1008 = vrot.lane.b32.xlu0 %v1000_v57, %s1754_s21 }
 0x98d   : > { %v993_v24 = vpop.permute.xlu1 %992  ;;  %v991_v27 = vpop.permute.xlu0 %990 }
 0x98e   : > { %v995_v29 = vpop.permute.xlu2 %994  ;;  %v1002_v30 = vmax.f32 %v982_v23, %v993_v24  ;;  %v1001_v31 = vmax.f32 %v981_v21, %v991_v27 }
 0x98f   : > { %v1003_v32 = vmax.f32 %v983_v28, %v995_v29 }
 0x990   : > { %1012 = vrot.lane.b32.xlu2 %v1002_v30, %s1754_s21  ;;  %1010 = vrot.lane.b32.xlu1 %v1001_v31, %s1754_s21 }
 0x991   : > { %1014 = vrot.lane.b32.xlu0 %v1003_v32, %s1754_s21 }
 0x9ea   : > { %v1013_v35 = vpop.permute.xlu2 %1012 }
 0x9eb   : > { %v1022_v25 = vmax.f32 %v958_v16, %v1013_v35 }
 0x9ed   : > { %v1026_v39 = vmul.f32 %v2110_v13, %v1022_v25 }
 0x9ef   : > { %v1030_v48 = vrot.slane %v1026_v39, 7  ;;  %v1038_v50 = vrot.slane %v1026_v39, 1 }
 0x9fa   : > { %v1009_v33 = vpop.permute.xlu0 %1008 }
 0x9fb   : > { %v1020_v36 = vmax.f32 %v2340_v54, %v1009_v33 }
 0x9fd   : > { %v1024_v62 = vmul.f32 %v2126_v19, %v1020_v36 }
 0x9ff   : > { %v1028_v53 = vrot.slane %v1024_v62, 7  ;;  %v1036_v42 = vrot.slane %v1024_v62, 1 }
 0xa02   : > { %v1011_v40 = vpop.permute.xlu1 %1010 }
 0xa03   : > { %v1021_v41 = vmax.f32 %v957_v43, %v1011_v40  ;;  %v1015_v45 = vpop.permute.xlu0 %1014 }
 0xa04   : > { %v1023_v47 = vmax.f32 %v959_v46, %v1015_v45 }
 0xa05   : > { %v1025_v38 = vmul.f32 %v2154_v34, %v1021_v41 }
 0xa06   : > { %v1027_v51 = vmul.f32 %v2145_v61, %v1023_v47 }
 0xa07   : > { %v1029_v55 = vrot.slane %v1025_v38, 7  ;;  %v1037_v58 = vrot.slane %v1025_v38, 1 }
 0xa08   : > { %v1031_v60 = vrot.slane %v1027_v51, 7  ;;  %v1039_v54 = vrot.slane %v1027_v51, 1 }
 0xa09   : > { %v1033_v63 = vsel %vm2710_vm14, %v1029_v55, %v1030_v48  ;;  %v1034_v52 = vsel %vm2711_vm1, %v1028_v53, %v1029_v55  ;;  %v1041_v0 = vsel %vm2683_vm0, %v1037_v58, %v1038_v50  ;;  %v1042_v5 = vsel %vm2712_vm6, %v1036_v42, %v1037_v58  ;;  %vm2724_vm14 = vmmov %vm2683_vm0 }
 0xa0a   : > { %v1045_v6 = vmax.f32 %v1034_v52, %v1041_v0  ;;  %v1035_v7 = vsel %vm2713_vm15, %v1031_v60, %v1028_v53  ;;  %v1040_v3 = vsel %vm2714_vm10, %v1038_v50, %v1039_v54  ;;  %v1032_v1 = vsel %vm2715_vm4, %v1030_v48, %v1031_v60  ;;  %vm2725_vm0 = vmmov %vm2711_vm1 }
 0xa0b   : > { %v1044_v8 = vmax.f32 %v1035_v7, %v1042_v5  ;;  %v1046_v16 = vmax.f32 %v1033_v63, %v1040_v3  ;;  %v1043_v9 = vsel %vm2716_vm2, %v1039_v54, %v1036_v42  ;;  %vm2726_vm6 = vmmov %vm2716_vm2 }
 0xa0c   : > { %v1049_v43 = vmax.f32 %v1025_v38, %v1045_v6  ;;  %v1047_v10 = vmax.f32 %v1032_v1, %v1043_v9  ;;  %vm2727_vm15 = vmmov %vm2725_vm0 }
 0xa0d   : > { %v1050_v46 = vmax.f32 %v1026_v39, %v1046_v16  ;;  %v1048_v49 = vmax.f32 %v1024_v62, %v1044_v8  ;;  %vm2728_vm10 = vmmov %vm2716_vm2 }
 0xa0e   : > { %1055 = vrot.lane.b32.xlu2 %v1049_v43, %s1752_s19  ;;  %v1051_v18 = vmax.f32 %v1027_v51, %v1047_v10  ;;  %vm2729_vm4 = vmmov %vm2725_vm0 }
 0xa0f   : > { %1058 = vrot.lane.b32.xlu0 %v1050_v46, %s1752_s19  ;;  %1052 = vrot.lane.b32.xlu1 %v1048_v49, %s1752_s19 }
 0xa17   : > { %1061 = vrot.lane.b32.xlu1 %v1051_v18, %s1752_s19 }
 0xa68   : > { %v1056_v44 = vpop.permute.xlu2 %1055 }
 0xa69   : > { %v1057_v11 = vsel %vm2717_vm8, %v1056_v44, %v1049_v43  ;;  %vm2730_vm8 = vmmov %vm2661_vm3 }
 0xa6a   : > { %1066 = vrot.lane.b32.xlu0 %v1057_v11, %s1752_s19 }
 0xa81   : > { %v1059_v14 = vpop.permute.xlu0 %1058  ;;  %v1053_v17 = vpop.permute.xlu1 %1052 }
 0xa82   : > { %v1060_v2 = vsel %vm2661_vm3, %v1059_v14, %v1050_v46  ;;  %v1054_v21 = vsel %vm2718_vm9, %v1053_v17, %v1048_v49  ;;  %vm2731_vm9 = vmmov %vm2661_vm3 }
 0xa83   : > { %1064 = vrot.lane.b32.xlu2 %v1054_v21, %s1752_s19  ;;  %1068 = vrot.lane.b32.xlu1 %v1060_v2, %s1752_s19 }
 0xa89   : > { %v1062_v23 = vpop.permute.xlu1 %1061 }
 0xa8a   : > { %v1063_v12 = vsel %vm2719_vm5, %v1062_v23, %v1051_v18  ;;  %vm2732_vm5 = vmmov %vm2661_vm3 }
 0xa8b   : > { %1070 = vrot.lane.b32.xlu2 %v1063_v12, %s1752_s19 }
 0xadc   : > { %v1067_v56 = vpop.permute.xlu0 %1066 }
 0xadd   : > { %v1073_v59 = vsel %vm2720_vm7, %v1067_v56, %v1049_v43  ;;  %v1065_v28 = vpop.permute.xlu2 %1064  ;;  %vm2733_vm7 = vmmov %vm2661_vm3 }
 0xade   : > { %v1072_v26 = vsel %vm2721_vm13, %v1065_v28, %v1048_v49  ;;  %1082 = vrot.lane.b32.xlu1 %v1073_v59, %s1753_s20  ;;  %vm2734_vm13 = vmmov %vm2661_vm3 }
 0xadf   : > { %1080 = vrot.lane.b32.xlu0 %v1072_v26, %s1753_s20 }
 0xae5   : > { %v1071_v57 = vpop.permute.xlu2 %1070 }
 0xae6   : > { %v1075_v24 = vsel %vm2722_vm12, %v1071_v57, %v1051_v18  ;;  %vm2735_vm12 = vmmov %vm2661_vm3 }
 0xae7   : > { %1086 = vrot.lane.b32.xlu0 %v1075_v24, %s1753_s20 }
 0xaf5   : > { %v1069_v27 = vpop.permute.xlu1 %1068 }
 0xaf6   : > { %v1074_v29 = vsel %vm2723_vm11, %v1069_v27, %v1050_v46  ;;  %vm2736_vm11 = vmmov %vm2661_vm3 }
 0xaf7   : > { %1084 = vrot.lane.b32.xlu2 %v1074_v29, %s1753_s20 }
 0xb50   : > { %v1083_v30 = vpop.permute.xlu1 %1082 }
 0xb51   : > { %v1081_v31 = vpop.permute.xlu0 %1080  ;;  %v1085_v32 = vpop.permute.xlu2 %1084  ;;  %v1093_v33 = vmax.f32 %v1073_v59, %v1083_v30 }
 0xb52   : > { %v1092_v35 = vmax.f32 %v1072_v26, %v1081_v31  ;;  %v1094_v25 = vmax.f32 %v1074_v29, %v1085_v32 }
 0xb53   : > { %1102 = vrot.lane.b32.xlu2 %v1093_v33, %s1754_s21 }
 0xb54   : > { %1100 = vrot.lane.b32.xlu1 %v1092_v35, %s1754_s21  ;;  %1104 = vrot.lane.b32.xlu0 %v1094_v25, %s1754_s21 }
 0xb59   : > { %v1087_v36 = vpop.permute.xlu0 %1086 }
 0xb5a   : > { %v1095_v39 = vmax.f32 %v1075_v24, %v1087_v36 }
 0xb5c   : > { %1106 = vrot.lane.b32.xlu1 %v1095_v39, %s1754_s21 }
 0xbad   : > { %v1103_v40 = vpop.permute.xlu2 %1102 }
 0xbae   : > { %v1113_v62 = vmax.f32 %v1049_v43, %v1103_v40 }
 0xbb0   : > { %v1117_v47 = vmul.f32 %v2154_v34, %v1113_v62 }
 0xbb2   : > { %v1121_v53 = vrot.slane %v1117_v47, 7  ;;  %v1129_v42 = vrot.slane %v1117_v47, 1 }
 0xbc6   : > { %v1105_v41 = vpop.permute.xlu0 %1104  ;;  %v1101_v45 = vpop.permute.xlu1 %1100 }
 0xbc7   : > { %v1114_v38 = vmax.f32 %v1050_v46, %v1105_v41  ;;  %v1112_v48 = vmax.f32 %v1048_v49, %v1101_v45 }
 0xbc9   : > { %v1118_v50 = vmul.f32 %v2110_v13, %v1114_v38  ;;  %v1116_v51 = vmul.f32 %v2126_v19, %v1112_v48 }
 0xbcb   : > { %v1130_v55 = vrot.slane %v1118_v50, 1  ;;  %v1120_v58 = vrot.slane %v1116_v51, 7  ;;  %v1122_v6 = vrot.slane %v1118_v50, 7  ;;  %v1128_v7 = vrot.slane %v1116_v51, 1 }
 0xbcd   : > { %v1133_v60 = vsel %vm2724_vm14, %v1129_v42, %v1130_v55  ;;  %v1126_v54 = vsel %vm2711_vm1, %v1120_v58, %v1121_v53  ;;  %v1125_v43 = vsel %vm2725_vm0, %v1121_v53, %v1122_v6  ;;  %v1134_v46 = vsel %vm2726_vm6, %v1128_v7, %v1129_v42  ;;  %vm2737_vm14 = vmmov %vm2725_vm0 }
 0xbce   : > { %v1137_v63 = vmax.f32 %v1126_v54, %v1133_v60  ;;  %v1107_v52 = vpop.permute.xlu1 %1106  ;;  %vm2738_vm1 = vmmov %vm2716_vm2 }
 0xbcf   : > { %v1115_v0 = vmax.f32 %v1051_v18, %v1107_v52  ;;  %vm2739_vm0 = vmmov %vm2738_vm1 }
 0xbd0   : > { %v2434_v5 = vmax.f32 %v1117_v47, %v1137_v63  ;;  %vm2740_vm6 = vmmov %vm2729_vm4 }
 0xbd1   : > { %v1119_v3 = vmul.f32 %v2145_v61, %v1115_v0 }
 0xbd2   : > { %1147 = vrot.lane.b32.xlu0 %v2434_v5, %s1752_s19 }
 0xbd3   : > { %v1123_v8 = vrot.slane %v1119_v3, 7  ;;  %v1131_v16 = vrot.slane %v1119_v3, 1 }
 0xbd5   : > { %v1127_v49 = vsel %vm2727_vm15, %v1123_v8, %v1120_v58  ;;  %v1132_v1 = vsel %vm2728_vm10, %v1130_v55, %v1131_v16  ;;  %v1124_v11 = vsel %vm2729_vm4, %v1122_v6, %v1123_v8  ;;  %v1135_v14 = vsel %vm2716_vm2, %v1131_v16, %v1128_v7  ;;  %vm2741_vm15 = vmmov %vm2729_vm4 }
 0xbd6   : > { %v1136_v9 = vmax.f32 %v1127_v49, %v1134_v46  ;;  %v1138_v10 = vmax.f32 %v1125_v43, %v1132_v1  ;;  %v1139_v17 = vmax.f32 %v1124_v11, %v1135_v14  ;;  %vm2742_vm10 = vmmov %vm2729_vm4 }
 0xbd7   : > { %vm2743_vm4 = vmmov %vm2739_vm0 }
 0xbd8   : > { %v2447_v18 = vmax.f32 %v1118_v50, %v1138_v10  ;;  %v1140_v44 = vmax.f32 %v1116_v51, %v1136_v9  ;;  %v1143_v2 = vmax.f32 %v1119_v3, %v1139_v17  ;;  %vm2744_vm2 = vmmov %vm2739_vm0 }
 0xbda   : > { %1150 = vrot.lane.b32.xlu1 %v2447_v18, %s1752_s19  ;;  %1144 = vrot.lane.b32.xlu2 %v1140_v44, %s1752_s19 }
 0xbe2   : > { %1153 = vrot.lane.b32.xlu2 %v1143_v2, %s1752_s19 }
 0xc34   : > { %v1145_v21 = vpop.permute.xlu2 %1144 }
 0xc35   : > { %v1146_v23 = vsel %vm2730_vm8, %v1145_v21, %v1140_v44  ;;  %vm2745_vm8 = vmmov %vm2661_vm3 }
 0xc36   : > { %1156 = vrot.lane.b32.xlu0 %v1146_v23, %s1752_s19 }
 0xc3c   : > { %v1154_v12 = vpop.permute.xlu2 %1153 }
 0xc3d   : > { %v1155_v56 = vsel %vm2661_vm3, %v1154_v12, %v1143_v2 }
 0xc3e   : > { %1162 = vrot.lane.b32.xlu0 %v1155_v56, %s1752_s19 }
 0xc44   : > { %v1148_v59 = vpop.permute.xlu0 %1147 }
 0xc45   : > { %v1149_v28 = vsel %vm2731_vm9, %v1148_v59, %v2434_v5  ;;  %vm2746_vm9 = vmmov %vm2661_vm3 }
 0xc46   : > { %1158 = vrot.lane.b32.xlu1 %v1149_v28, %s1752_s19 }
 0xc4c   : > { %v1151_v26 = vpop.permute.xlu1 %1150 }
 0xc4d   : > { %v1152_v57 = vsel %vm2732_vm5, %v1151_v26, %v2447_v18  ;;  %vm2747_vm5 = vmmov %vm2661_vm3 }
 0xc4e   : > { %1160 = vrot.lane.b32.xlu2 %v1152_v57, %s1752_s19 }
 0xca8   : > { %v1157_v24 = vpop.permute.xlu0 %1156  ;;  %v1161_v27 = vpop.permute.xlu2 %1160 }
 0xca9   : > { %v1164_v29 = vsel %vm2733_vm7, %v1157_v24, %v1140_v44  ;;  %v1166_v30 = vsel %vm2734_vm13, %v1161_v27, %v2447_v18  ;;  %vm2748_vm7 = vmmov %vm2661_vm3 }
 0xcaa   : > { %1172 = vrot.lane.b32.xlu1 %v1164_v29, %s1753_s20  ;;  %1176 = vrot.lane.b32.xlu0 %v1166_v30, %s1753_s20  ;;  %vm2749_vm13 = vmmov %vm2661_vm3 }
 0xcb0   : > { %v1163_v31 = vpop.permute.xlu0 %1162 }
 0xcb1   : > { %v1167_v32 = vsel %vm2735_vm12, %v1163_v31, %v1143_v2  ;;  %vm2750_vm12 = vmmov %vm2661_vm3 }
 0xcb2   : > { %1178 = vrot.lane.b32.xlu1 %v1167_v32, %s1753_s20 }
 0xcb8   : > { %v1159_v33 = vpop.permute.xlu1 %1158 }
 0xcb9   : > { %v1165_v35 = vsel %vm2736_vm11, %v1159_v33, %v2434_v5  ;;  %vm2751_vm11 = vmmov %vm2661_vm3 }
 0xcba   : > { %1174 = vrot.lane.b32.xlu2 %v1165_v35, %s1753_s20 }
 0xd14   : > { %v1175_v25 = vpop.permute.xlu2 %1174 }
 0xd15   : > { %v1185_v36 = vmax.f32 %v1165_v35, %v1175_v25 }
 0xd17   : > { %1194 = vrot.lane.b32.xlu0 %v1185_v36, %s1754_s21 }
 0xd1c   : > { %v1173_v39 = vpop.permute.xlu1 %1172  ;;  %v1177_v40 = vpop.permute.xlu0 %1176 }
 0xd1d   : > { %v1184_v62 = vmax.f32 %v1164_v29, %v1173_v39  ;;  %v1186_v41 = vmax.f32 %v1166_v30, %v1177_v40 }
 0xd1f   : > { %1192 = vrot.lane.b32.xlu2 %v1184_v62, %s1754_s21  ;;  %1196 = vrot.lane.b32.xlu1 %v1186_v41, %s1754_s21 }
 0xd24   : > { %v1179_v45 = vpop.permute.xlu1 %1178 }
 0xd25   : > { %v1187_v47 = vmax.f32 %v1167_v32, %v1179_v45 }
 0xd27   : > { %1198 = vrot.lane.b32.xlu2 %v1187_v47, %s1754_s21 }
 0xd79   : > { %v1193_v38 = vpop.permute.xlu2 %1192 }
 0xd7a   : > { %v1204_v51 = vmax.f32 %v1140_v44, %v1193_v38 }
 0xd7c   : > { %v1208_v55 = vmul.f32 %v2126_v19, %v1204_v51 }
 0xd7e   : > { %v1212_v63 = vrot.slane %v1208_v55, 7  ;;  %v1220_v52 = vrot.slane %v1208_v55, 1 }
 0xd81   : > { %v1199_v48 = vpop.permute.xlu2 %1198 }
 0xd82   : > { %v1207_v50 = vmax.f32 %v1143_v2, %v1199_v48 }
 0xd84   : > { %v1211_v53 = vmul.f32 %v2145_v61, %v1207_v50 }
 0xd86   : > { %v1215_v60 = vrot.slane %v1211_v53, 7  ;;  %v1223_v43 = vrot.slane %v1211_v53, 1 }
 0xd88   : > { %v1219_v6 = vsel %vm2737_vm14, %v1215_v60, %v1212_v63  ;;  %v1227_v10 = vsel %vm2739_vm0, %v1223_v43, %v1220_v52  ;;  %vm2752_vm14 = vmmov %vm2740_vm6 }
 0xd89   : > { %v1195_v42 = vpop.permute.xlu0 %1194 }
 0xd8a   : > { %v1205_v58 = vmax.f32 %v2434_v5, %v1195_v42 }
 0xd8c   : > { %v1209_v54 = vmul.f32 %v2154_v34, %v1205_v58 }
 0xd8e   : > { %v1221_v0 = vrot.slane %v1209_v54, 1  ;;  %v1213_v46 = vrot.slane %v1209_v54, 7 }
 0xd90   : > { %v1226_v7 = vsel %vm2738_vm1, %v1220_v52, %v1221_v0  ;;  %v1218_v44 = vsel %vm2740_vm6, %v1212_v63, %v1213_v46  ;;  %vm2753_vm1 = vmmov %vm2740_vm6 }
 0xd91   : > { %v1228_v3 = vmax.f32 %v1219_v6, %v1226_v7  ;;  %v1197_v8 = vpop.permute.xlu1 %1196  ;;  %vm2754_vm6 = vmmov %vm2739_vm0 }
 0xd92   : > { %v1206_v16 = vmax.f32 %v2447_v18, %v1197_v8 }
 0xd93   : > { %v2490_v49 = vmax.f32 %v1208_v55, %v1228_v3 }
 0xd94   : > { %v1210_v5 = vmul.f32 %v2110_v13, %v1206_v16 }
 0xd95   : > { %1236 = vrot.lane.b32.xlu0 %v2490_v49, %s1752_s19 }
 0xd96   : > { %v1214_v1 = vrot.slane %v1210_v5, 7  ;;  %v1222_v9 = vrot.slane %v1210_v5, 1 }
 0xd98   : > { %v1216_v18 = vsel %vm2741_vm15, %v1214_v1, %v1215_v60  ;;  %v1217_v11 = vsel %vm2742_vm10, %v1213_v46, %v1214_v1  ;;  %v1224_v14 = vsel %vm2743_vm4, %v1222_v9, %v1223_v43  ;;  %v1225_v17 = vsel %vm2744_vm2, %v1221_v0, %v1222_v9  ;;  %vm2755_vm15 = vmmov %vm2753_vm1 }
 0xd99   : > { %v1229_v2 = vmax.f32 %v1218_v44, %v1225_v17  ;;  %v1230_v21 = vmax.f32 %v1217_v11, %v1224_v14  ;;  %v1231_v23 = vmax.f32 %v1216_v18, %v1227_v10  ;;  %vm2756_vm10 = vmmov %vm2739_vm0 }
 0xd9a   : > { %vm2757_vm4 = vmmov %vm2753_vm1 }
 0xd9b   : > { %v1234_v12 = vmax.f32 %v1210_v5, %v1230_v21  ;;  %v1233_v56 = vmax.f32 %v1209_v54, %v1229_v2  ;;  %v1235_v59 = vmax.f32 %v1211_v53, %v1231_v23  ;;  %vm2758_vm2 = vmmov %vm2739_vm0 }
 0xd9d   : > { %1239 = vrot.lane.b32.xlu1 %v1233_v56, %s1752_s19  ;;  %1242 = vrot.lane.b32.xlu2 %v1234_v12, %s1752_s19 }
 0xd9e   : > { %1245 = vrot.lane.b32.xlu0 %v1235_v59, %s1752_s19 }
 0xdf7   : > { %v1243_v28 = vpop.permute.xlu2 %1242 }
 0xdf8   : > { %v1244_v26 = vsel %vm2745_vm8, %v1243_v28, %v1234_v12  ;;  %vm2759_vm8 = vmmov %vm2661_vm3 }
 0xdf9   : > { %1252 = vrot.lane.b32.xlu0 %v1244_v26, %s1752_s19 }
 0xe07   : > { %v1237_v57 = vpop.permute.xlu0 %1236 }
 0xe08   : > { %v1238_v24 = vsel %vm2661_vm3, %v1237_v57, %v2490_v49 }
 0xe09   : > { %1248 = vrot.lane.b32.xlu1 %v1238_v24, %s1752_s19 }
 0xe0f   : > { %v1240_v27 = vpop.permute.xlu1 %1239 }
 0xe10   : > { %v1241_v29 = vsel %vm2746_vm9, %v1240_v27, %v1233_v56  ;;  %v1246_v30 = vpop.permute.xlu0 %1245  ;;  %vm2760_vm9 = vmmov %vm2661_vm3 }
 0xe11   : > { %v1247_v31 = vsel %vm2747_vm5, %v1246_v30, %v1235_v59  ;;  %1250 = vrot.lane.b32.xlu2 %v1241_v29, %s1752_s19  ;;  %vm2761_vm5 = vmmov %vm2661_vm3 }
 0xe12   : > { %1254 = vrot.lane.b32.xlu1 %v1247_v31, %s1752_s19 }
 0xe6b   : > { %v1251_v32 = vpop.permute.xlu2 %1250  ;;  %v1253_v33 = vpop.permute.xlu0 %1252 }
 0xe6c   : > { %v1257_v35 = vsel %vm2748_vm7, %v1251_v32, %v1233_v56  ;;  %v1258_v25 = vsel %vm2749_vm13, %v1253_v33, %v1234_v12  ;;  %vm2762_vm7 = vmmov %vm2661_vm3 }
 0xe6d   : > { %1266 = vrot.lane.b32.xlu0 %v1257_v35, %s1753_s20  ;;  %1268 = vrot.lane.b32.xlu1 %v1258_v25, %s1753_s20  ;;  %vm2763_vm13 = vmmov %vm2661_vm3 }
 0xe7b   : > { %v1249_v36 = vpop.permute.xlu1 %1248 }
 0xe7c   : > { %v1256_v39 = vsel %vm2750_vm12, %v1249_v36, %v2490_v49  ;;  %vm2764_vm12 = vmmov %vm2661_vm3 }
 0xe7d   : > { %1264 = vrot.lane.b32.xlu2 %v1256_v39, %s1753_s20 }
 0xe84   : > { %v1255_v40 = vpop.permute.xlu1 %1254 }
 0xe85   : > { %v1259_v62 = vsel %vm2751_vm11, %v1255_v40, %v1235_v59  ;;  %vm2765_vm11 = vmmov %vm2661_vm3 }
 0xe86   : > { %1270 = vrot.lane.b32.xlu2 %v1259_v62, %s1753_s20 }
 0xed7   : > { %v1265_v41 = vpop.permute.xlu2 %1264 }
 0xed8   : > { %v1276_v45 = vmax.f32 %v1256_v39, %v1265_v41 }
 0xeda   : > { %1284 = vrot.lane.b32.xlu0 %v1276_v45, %s1754_s21 }
 0xedf   : > { %v1269_v47 = vpop.permute.xlu1 %1268  ;;  %v1267_v38 = vpop.permute.xlu0 %1266 }
 0xee0   : > { %v1271_v48 = vpop.permute.xlu2 %1270  ;;  %v1278_v50 = vmax.f32 %v1258_v25, %v1269_v47  ;;  %v1277_v51 = vmax.f32 %v1257_v35, %v1267_v38 }
 0xee1   : > { %v1279_v53 = vmax.f32 %v1259_v62, %v1271_v48 }
 0xee2   : > { %1288 = vrot.lane.b32.xlu2 %v1278_v50, %s1754_s21  ;;  %1286 = vrot.lane.b32.xlu1 %v1277_v51, %s1754_s21 }
 0xee3   : > { %1290 = vrot.lane.b32.xlu0 %v1279_v53, %s1754_s21 }
 0xf3c   : > { %v1289_v55 = vpop.permute.xlu2 %1288 }
 0xf3d   : > { %v1298_v58 = vmax.f32 %v1234_v12, %v1289_v55 }
 0xf3f   : > { %v1302_v54 = vmul.f32 %v2110_v13, %v1298_v58 }
 0xf41   : > { %v1306_v8 = vrot.slane %v1302_v54, 7  ;;  %v1314_v16 = vrot.slane %v1302_v54, 1 }
 0xf4c   : > { %v1285_v42 = vpop.permute.xlu0 %1284 }
 0xf4d   : > { %v1296_v60 = vmax.f32 %v2490_v49, %v1285_v42 }
 0xf4f   : > { %v1300_v52 = vmul.f32 %v2126_v19, %v1296_v60 }
 0xf51   : > { %v1304_v46 = vrot.slane %v1300_v52, 7  ;;  %v1312_v5 = vrot.slane %v1300_v52, 1 }
 0xf54   : > { %v1287_v63 = vpop.permute.xlu1 %1286 }
 0xf55   : > { %v1297_v0 = vmax.f32 %v1233_v56, %v1287_v63  ;;  %v1291_v6 = vpop.permute.xlu0 %1290 }
 0xf56   : > { %v1299_v7 = vmax.f32 %v1235_v59, %v1291_v6 }
 0xf57   : > { %v1301_v3 = vmul.f32 %v2154_v34, %v1297_v0 }
 0xf58   : > { %v1303_v43 = vmul.f32 %v2145_v61, %v1299_v7 }
 0xf59   : > { %v1305_v1 = vrot.slane %v1301_v3, 7  ;;  %v1313_v9 = vrot.slane %v1301_v3, 1 }
 0xf5a   : > { %v1307_v10 = vrot.slane %v1303_v43, 7  ;;  %v1315_v49 = vrot.slane %v1303_v43, 1 }
 0xf5b   : > { %v1309_v44 = vsel %vm2752_vm14, %v1305_v1, %v1306_v8  ;;  %v1310_v18 = vsel %vm2753_vm1, %v1304_v46, %v1305_v1  ;;  %v1317_v11 = vsel %vm2739_vm0, %v1313_v9, %v1314_v16  ;;  %v1318_v14 = vsel %vm2754_vm6, %v1312_v5, %v1313_v9 }
 0xf5c   : > { %v1321_v17 = vmax.f32 %v1310_v18, %v1317_v11  ;;  %v1311_v2 = vsel %vm2755_vm15, %v1307_v10, %v1304_v46  ;;  %v1316_v21 = vsel %vm2756_vm10, %v1314_v16, %v1315_v49  ;;  %v1308_v26 = vsel %vm2757_vm4, %v1306_v8, %v1307_v10 }
 0xf5d   : > { %v1320_v23 = vmax.f32 %v1311_v2, %v1318_v14  ;;  %v1322_v12 = vmax.f32 %v1309_v44, %v1316_v21  ;;  %v1319_v57 = vsel %vm2758_vm2, %v1315_v49, %v1312_v5  ;;  %vm2766_vm14 = vcmask 261120  }
 0xf5e   : > { %v1325_v56 = vmax.f32 %v1301_v3, %v1321_v17  ;;  %v1323_v24 = vmax.f32 %v1308_v26, %v1319_v57  ;;  %vm2767_vm1 = vmmov %vm2766_vm14 }
 0xf5f   : > { %v1326_v59 = vmax.f32 %v1302_v54, %v1322_v12  ;;  %v1324_v28 = vmax.f32 %v1300_v52, %v1320_v23  ;;  %vm2768_vm0 = vmmov %vm2767_vm1 }
 0xf60   : > { %1331 = vrot.lane.b32.xlu2 %v1325_v56, %s1752_s19  ;;  %v1327_v27 = vmax.f32 %v1303_v43, %v1323_v24  ;;  %vm2769_vm6 = vmmov %vm2768_vm0 }
 0xf61   : > { %1334 = vrot.lane.b32.xlu0 %v1326_v59, %s1752_s19  ;;  %1328 = vrot.lane.b32.xlu1 %v1324_v28, %s1752_s19 }
 0xf69   : > { %1337 = vrot.lane.b32.xlu1 %v1327_v27, %s1752_s19 }
 0xfba   : > { %v1332_v29 = vpop.permute.xlu2 %1331 }
 0xfbb   : > { %v1333_v30 = vsel %vm2759_vm8, %v1332_v29, %v1325_v56 }
 0xfbc   : > { %1342 = vrot.lane.b32.xlu0 %v1333_v30, %s1752_s19 }
 0xfd3   : > { %v1335_v31 = vpop.permute.xlu0 %1334  ;;  %v1329_v32 = vpop.permute.xlu1 %1328 }
 0xfd4   : > { %v1336_v33 = vsel %vm2661_vm3, %v1335_v31, %v1326_v59  ;;  %v1330_v35 = vsel %vm2760_vm9, %v1329_v32, %v1324_v28 }
 0xfd5   : > { %1340 = vrot.lane.b32.xlu2 %v1330_v35, %s1752_s19  ;;  %1344 = vrot.lane.b32.xlu1 %v1336_v33, %s1752_s19 }
 0xfdb   : > { %v1338_v25 = vpop.permute.xlu1 %1337 }
 0xfdc   : > { %v1339_v36 = vsel %vm2761_vm5, %v1338_v25, %v1327_v27 }
 0xfdd   : > { %1346 = vrot.lane.b32.xlu2 %v1339_v36, %s1752_s19 }
0x102e   : > { %v1343_v39 = vpop.permute.xlu0 %1342 }
0x102f   : > { %v1349_v40 = vsel %vm2762_vm7, %v1343_v39, %v1325_v56  ;;  %v1341_v62 = vpop.permute.xlu2 %1340 }
0x1030   : > { %v1348_v41 = vsel %vm2763_vm13, %v1341_v62, %v1324_v28  ;;  %1358 = vrot.lane.b32.xlu1 %v1349_v40, %s1753_s20 }
0x1031   : > { %1356 = vrot.lane.b32.xlu0 %v1348_v41, %s1753_s20 }
0x1037   : > { %v1347_v45 = vpop.permute.xlu2 %1346 }
0x1038   : > { %v1351_v47 = vsel %vm2764_vm12, %v1347_v45, %v1327_v27 }
0x1039   : > { %1362 = vrot.lane.b32.xlu0 %v1351_v47, %s1753_s20 }
0x1047   : > { %v1345_v38 = vpop.permute.xlu1 %1344 }
0x1048   : > { %v1350_v48 = vsel %vm2765_vm11, %v1345_v38, %v1326_v59 }
0x1049   : > { %1360 = vrot.lane.b32.xlu2 %v1350_v48, %s1753_s20 }
0x10a2   : > { %v1359_v50 = vpop.permute.xlu1 %1358 }
0x10a3   : > { %v1357_v51 = vpop.permute.xlu0 %1356  ;;  %v1361_v53 = vpop.permute.xlu2 %1360  ;;  %v1369_v42 = vmax.f32 %v1349_v40, %v1359_v50 }
0x10a4   : > { %v1368_v55 = vmax.f32 %v1348_v41, %v1357_v51  ;;  %v1370_v58 = vmax.f32 %v1350_v48, %v1361_v53 }
0x10a5   : > { %1378 = vrot.lane.b32.xlu2 %v1369_v42, %s1754_s21 }
0x10a6   : > { %1376 = vrot.lane.b32.xlu1 %v1368_v55, %s1754_s21  ;;  %1380 = vrot.lane.b32.xlu0 %v1370_v58, %s1754_s21 }
0x10ab   : > { %v1363_v60 = vpop.permute.xlu0 %1362 }
0x10ac   : > { %v1371_v54 = vmax.f32 %v1351_v47, %v1363_v60 }
0x10ae   : > { %1382 = vrot.lane.b32.xlu1 %v1371_v54, %s1754_s21 }
0x10ff   : > { %v1379_v63 = vpop.permute.xlu2 %1378 }
0x1100   : > { %v1389_v7 = vmax.f32 %v1325_v56, %v1379_v63 }
0x1102   : > { %v1393_v16 = vmul.f32 %v2154_v34, %v1389_v7  }
0x1104   : > { %v1397_v9 = vsub.f32 %v1393_v16, %v1730_v37 }
0x1106   : > { %v1401_v11 = vsel %vm2767_vm1, %v1397_v9, -inf }
0x1118   : > { %v1381_v52 = vpop.permute.xlu0 %1380  ;;  %v1377_v0 = vpop.permute.xlu1 %1376 }
0x1119   : > { %v1388_v6 = vmax.f32 %v1324_v28, %v1377_v0  ;;  %v1390_v3 = vmax.f32 %v1326_v59, %v1381_v52 }
0x111b   : > { %v1392_v8 = vmul.f32 %v2126_v19, %v1388_v6   ;;  %v1394_v43 = vmul.f32 %v2110_v13, %v1390_v3  }
0x111d   : > { %v1396_v5 = vsub.f32 %v1392_v8, %v1734_v20  ;;  %v1398_v10 = vsub.f32 %v1394_v43, %v1726_v15 }
0x111f   : > { %v1400_v44 = vsel %vm2766_vm14, %v1396_v5, -inf  ;;  %v1402_v14 = vsel %vm2768_vm0, %v1398_v10, -inf }
0x1120   : > { %v1383_v46 = vpop.permute.xlu1 %1382  ;;  %v1404_v2 = vmax.f32 %v1400_v44, %v1401_v11 }
0x1121   : > { %v1391_v1 = vmax.f32 %v1327_v27, %v1383_v46 }
0x1123   : > { %v1395_v49 = vmul.f32 %v2145_v61, %v1391_v1  }
0x1125   : > { %v1399_v18 = vsub.f32 %v1395_v49, %v1722_v4  ;;  %v2770_v4 = vmov %v1395_v49 }
0x1127   : > { %v1403_v17 = vsel %vm2769_vm6, %v1399_v18, -inf }
0x1128   : > { %v1405_v21 = vmax.f32 %v1402_v14, %v1403_v17 }
0x112a   : > { %v1406_v20 = vmax.f32 %v1404_v2, %v1405_v21 }
0x112c   : > { %1407 = vmax.xlane.f32.xlu2 %v1406_v20  ;;  %v2773_v20 = vmov %v1392_v8 }
0x119f   : > { %v1408_v37 = vpop.xlane.xlu2 %1407 }
0x11a0   : > { %v1409_v23 = vrot.slane %v1408_v37, 4 }
0x11a2   : > { %v1410_v15 = vmax.f32 %v1408_v37, %v1409_v23  ;;  %v2772_v37 = vmov %v1393_v16 }
0x11a4   : > { %v1411_v12 = vrot.slane %v1410_v15, 2 }
0x11a6   : > { %v1412_v56 = vmax.f32 %v1410_v15, %v1411_v12  ;;  %v2771_v15 = vmov %v1394_v43 }
0x11a8   : > { %v1413_v59 = vrot.slane %v1412_v56, 1 }
0x11aa   : > { %v1414_v28 = vmax.f32 %v1412_v56, %v1413_v59 }
0x11ac   : > { %1488 = vpush %v1414_v28 }
0x11dd   : > { %s1489_s22 = spop %1488 }
0x11de   : > { %p1416_p0 = scmp.gt.f32.partialorder %s1489_s22, 0.0 }
0x11e0   : > { %p656_p2 = pnand %p1416_p0, %p654_p1 }
0x11e1   :  { %vm2774_vm15 = vcmask (%p656_p2), 261120   ;;  %s1429_s25 = sshll.u32 (%p656_p2), %s2615_s5, 4  ;;  %s1755_s28 = smov (%p656_p2), [#allocation11]   ;;  %s1430_s25 = int_to_ptr.hbm [resolvable:$true] %s1429_s25 }
0x11e2   :  { %659 = sbr.rel (!%p656_p2) target bundleno = 743 (0x2e7), region = 67  ;;  %1419 = vst.msk [vmem:[#allocation11] sm:$0xff] (%p656_p2), %vm2774_vm15, %v1392_v8  ;;  %vm2775_vm10 = vmmov (%p656_p2), %vm2774_vm15  ;;  %s1427_s29 = sshll.u32 (%p656_p2), %s1755_s28, 4  ;;  %s1428_s29 = int_to_ptr.vmem [resolvable:$true] %s1427_s29 }
0x11e3   :  { %1420 = vst.msk [vmem:[#allocation11 + $0x8] sm:$0xff] (%p656_p2), %vm2775_vm10, %v1393_v16  ;;  %vm2776_vm4 = vmmov (%p656_p2), %vm2775_vm10 }
0x11e4   :  { %1421 = vst.msk [vmem:[#allocation11 + $0x10] sm:$0xff] (%p656_p2), %vm2776_vm4, %v1394_v43  ;;  %vm2777_vm2 = vmmov (%p656_p2), %vm2776_vm4 }
0x11e5   :  { %1422 = vst.msk [vmem:[#allocation11 + $0x18] sm:$0xff] (%p656_p2), %vm2777_vm2, %v1395_v49 }
0x11e6   :  { %1435 = dma.vmem_to_hbm [thread:$0]  (%p656_p2), %s1428_s29, 512, %s1430_s25, [#allocation4], %s1741_s26, %s1741_s26, %s1742_s27  }
0x11e7   :  { %1718 = dma.done.wait [#allocation4], 512  }
0x11e8   :  { %1719 = vsyncadd [#allocation4], 4294966784 }
0x11e9   :  { %1440 = vsyncpa [#allocation3], 1 }
0x11ea   :  { %1441 = vsyncpa [#allocation6], 1 }
0x11eb   :  { %1442 = vsyncpa [#allocation9], 1 }
0x11ec   :  { %1443 = vsyncpa [#allocation4], 1 }

</bundles_post_ra>
